<compile_context>
chip_gen: v7x
topology: tpu7x:2x2x1
jax: 0.10.0
libtpu: 0.0.40
codegen_flags: <defaults>
</compile_context>

<pallas_src>
import math

import numpy as np
import jax
import jax.numpy as jnp
from jax.experimental import pallas as pl
from jax.experimental.pallas import tpu as pltpu

# ----------------------------- static configuration ----------------------------------
SAMPLE_RATE = 16000
WIN_LENGTH = int(SAMPLE_RATE * 25.0 / 1000)   # 400  (frame_length = 25 ms)
HOP_LENGTH = int(SAMPLE_RATE * 10.0 / 1000)   # 160  (frame_shift  = 10 ms)
N_FFT = 512                                   # next power of two >= 400
N_BINS = N_FFT // 2                           # 256; Nyquist bin dropped (its mel weight is 0)
N_MELS = 23
N_MFCC = 13
LOW_FREQ = 20.0
PREEMPH = 0.97
CEPSTRAL_LIFTER = 22.0
EPS = float(np.finfo(np.float32).eps)

TM_MAX = 1024                                 # frames per tile (lane axis); multiple of 128
TAIL_LANES = 128                              # lane-aligned width of the 2-hop overlap fetch
REM = WIN_LENGTH - 2 * HOP_LENGTH             # 80: samples of the 3rd hop a frame touches

# bf16 for the dominant DFT matmul (frames + matrix); f32 accumulation. Set to jnp.float32
# for stricter parity with a CPU torchaudio reference (at ~3x MXU cost, 2x waveform DMA).
DFT_DTYPE = jnp.bfloat16


# ----------------------------- deterministic constants --------------------------------
def _povey_window() -> np.ndarray:
    n = np.arange(WIN_LENGTH, dtype=np.float64)
    hann = 0.5 - 0.5 * np.cos(2.0 * math.pi * n / (WIN_LENGTH - 1))
    return hann ** 0.85                                                     # (win,)


def _fused_dft_matrix() -> np.ndarray:
    """(D_dc @ P_preemph @ diag(povey) @ [cos | sin])^T -> (2*N_BINS, WIN_LENGTH) f32.

    Folds remove_dc_offset, preemphasis and the window into the real-DFT matrix, so the
    MXU matmul(s) per frame tile yield [re; im] of the zero-padded rfft directly.
    """
    win = WIN_LENGTH
    # DC removal: y = x - mean(x)
    d = np.eye(win) - np.full((win, win), 1.0 / win)
    # preemphasis: y[j] = x[j] - 0.97 * x[max(j-1, 0)]   (replicate-pad first sample)
    p = np.eye(win)
    p[0, 0] -= PREEMPH
    for j in range(1, win):
        p[j - 1, j] -= PREEMPH
    w = np.diag(_povey_window())
    t = np.arange(win, dtype=np.float64)[:, None]
    k = np.arange(N_BINS, dtype=np.float64)[None, :]
    ang = 2.0 * math.pi * t * k / N_FFT
    c = np.concatenate([np.cos(ang), np.sin(ang)], axis=1)                  # (win, 2*N_BINS)
    m = d @ p @ w @ c                                                       # (win, 2*N_BINS)
    return np.ascontiguousarray(m.T).astype(np.float32)                     # (2*N_BINS, win)


def _mel_banks_t() -> np.ndarray:
    """Kaldi triangular mel filterbank, transposed-pipeline layout (N_MELS, N_BINS)."""
    def mel(f):
        return 1127.0 * np.log(1.0 + f / 700.0)

    high_freq = 0.5 * SAMPLE_RATE                  # high_freq default 0.0 -> nyquist
    fft_bin_width = SAMPLE_RATE / N_FFT
    mel_low = mel(LOW_FREQ)
    mel_high = mel(high_freq)
    mel_delta = (mel_high - mel_low) / (N_MELS + 1)

    b = np.arange(N_MELS, dtype=np.float64)[:, None]
    left = mel_low + b * mel_delta
    center = mel_low + (b + 1.0) * mel_delta
    right = mel_low + (b + 2.0) * mel_delta

    m = mel(fft_bin_width * np.arange(N_BINS, dtype=np.float64))[None, :]
    up = (m - left) / (center - left)
    down = (right - m) / (right - center)
    fb = np.maximum(0.0, np.minimum(up, down))                              # (N_MELS, N_BINS)
    return fb.astype(np.float32)


def _dct_lifter_t() -> np.ndarray:
    """Ortho DCT (Kaldi first-column convention) with the cepstral lifter folded in,
    transposed for the lane-dense pipeline: (N_MFCC, N_MELS)."""
    n = np.arange(N_MELS, dtype=np.float64)
    k = np.arange(N_MELS, dtype=np.float64)[:, None]
    dct = np.cos(math.pi / N_MELS * (n + 0.5) * k)                          # (k, n)
    dct[0] *= 1.0 / math.sqrt(2.0)
    dct *= math.sqrt(2.0 / N_MELS)
    dct = dct.T                                                             # (n_mels, n_mels)
    dct[:, 0] = math.sqrt(1.0 / N_MELS)                                     # Kaldi convention
    dct = dct[:, :N_MFCC]                                                   # (n_mels, n_mfcc)
    i = np.arange(N_MFCC, dtype=np.float64)
    lifter = 1.0 + 0.5 * CEPSTRAL_LIFTER * np.sin(math.pi * i / CEPSTRAL_LIFTER)
    return np.ascontiguousarray((dct * lifter[None, :]).T).astype(np.float32)  # (n_mfcc, n_mels)


# ----------------------------- Pallas kernel ------------------------------------------
def _mfcc_kernel(w_ref, tail_ref, d1_ref, d2_ref, d3_ref, mel_ref, dct_ref, out_ref,
                 strip_ref):
    # w_ref:    (1, HOP, TM)      hop-major waveform tile, hop index on the lane axis
    # tail_ref: (1, HOP, 128)     next 128 hops (only the first 2 are used)
    # strip_ref:(HOP, TM + 128)   VMEM scratch holding the contiguous hop strip for this tile
    tm = w_ref.shape[2]
    s_main = w_ref[0]                                                        # (HOP, TM)
    strip_ref[:, :tm] = s_main
    strip_ref[:, tm:] = tail_ref[0]

    # Fused (DC-removal + preemph + povey window + zero-padded rDFT), decomposed over the
    # 2.5 hops that each 25 ms frame spans; f32 accumulation on the MXU.
    spec = jnp.dot(d1_ref[...], s_main, preferred_element_type=jnp.float32)          # hop j
    spec = spec + jnp.dot(d2_ref[...], strip_ref[:, 1:tm + 1],
                          preferred_element_type=jnp.float32)                        # hop j+1
    spec = spec + jnp.dot(d3_ref[...], strip_ref[:REM, 2:tm + 2],
                          preferred_element_type=jnp.float32)                        # hop j+2[:80]

    re = spec[:N_BINS]
    im = spec[N_BINS:]
    power = re * re + im * im                                                # (N_BINS, TM)

    # mel filterbank + log (f32; tiny next to the DFT matmul)
    mel = jnp.dot(mel_ref[...], power, preferred_element_type=jnp.float32)   # (N_MELS, TM)
    logmel = jnp.log(jnp.maximum(mel, EPS))

    # DCT (lifter pre-folded) -> lane-dense (N_MFCC, TM) output block
    out_ref[0] = jnp.dot(dct_ref[...], logmel, preferred_element_type=jnp.float32)


# ----------------------------- wrapper -------------------------------------------------
def kaldi_mfcc(waveform: jax.Array) -> jax.Array:
    """waveform: (B, T) or (B, 1, T) float32 -> (B, n_mfcc, n_frames) or (B, 1, n_mfcc, n_frames)."""
    has_channel = waveform.ndim == 3
    if has_channel:
        assert waveform.shape[1] == 1, "channel dim must be 1"
        waveform = waveform[:, 0]
    waveform = waveform.astype(jnp.float32)
    B, T = waveform.shape
    assert T >= WIN_LENGTH, "waveform too short for a single frame (snip_edges=True)"
    m = 1 + (T - WIN_LENGTH) // HOP_LENGTH                                   # snip_edges=True

    # frames-per-tile: multiple of 128, capped at TM_MAX; for B==1 force >= 2 tiles when
    # possible so both v7x TensorCores get work (harmless on v5e/v6e).
    per_tile = (m + 1) // 2 if B == 1 else m
    tm = max(128, min(TM_MAX, ((per_tile + 127) // 128) * 128))
    n_tiles = (m + tm - 1) // tm
    m_pad = n_tiles * tm

    # Hop-major waveform (B, HOP, n_hops): cheap pad + reshape + transpose (no gather, no
    # 2.5x framed-HBM amplification).  Extra 128 hops cover the 2-hop tile overlap DMA.
    n_hops = m_pad + TAIL_LANES
    t_pad = n_hops * HOP_LENGTH
    wav = jnp.pad(waveform, ((0, 0), (0, t_pad - T)))
    w_hop = jnp.transpose(wav.reshape(B, n_hops, HOP_LENGTH).astype(DFT_DTYPE), (0, 2, 1))

    dft = _fused_dft_matrix()                                                # (512, 400) f32
    d1 = jnp.asarray(dft[:, :HOP_LENGTH], dtype=DFT_DTYPE)                   # (512, 160)
    d2 = jnp.asarray(dft[:, HOP_LENGTH:2 * HOP_LENGTH], dtype=DFT_DTYPE)     # (512, 160)
    d3 = jnp.asarray(dft[:, 2 * HOP_LENGTH:], dtype=DFT_DTYPE)               # (512, 80)
    mel_t = jnp.asarray(_mel_banks_t())                                      # (23, 256) f32
    dct_t = jnp.asarray(_dct_lifter_t())                                     # (13, 23)  f32

    dft_bytes = 2 if DFT_DTYPE == jnp.bfloat16 else 4
    cost = pl.CostEstimate(
        flops=int(B * m_pad * (2 * 2 * N_BINS * WIN_LENGTH + 3 * N_BINS
                               + 2 * N_MELS * N_BINS + 2 * N_MFCC * N_MELS)),
        transcendentals=int(B * m_pad * N_MELS),
        bytes_accessed=int(B * HOP_LENGTH * (m_pad + n_tiles * TAIL_LANES) * dft_bytes
                           + 2 * N_BINS * WIN_LENGTH * dft_bytes
                           + (N_MELS * N_BINS + N_MFCC * N_MELS) * 4
                           + B * N_MFCC * m_pad * 4),
    )

    tiles_per_tail = tm // TAIL_LANES
    const_map = lambda b, t: (0, 0)
    out = pl.pallas_call(
        _mfcc_kernel,
        out_shape=jax.ShapeDtypeStruct((B, N_MFCC, m_pad), jnp.float32),
        grid_spec=pltpu.PrefetchScalarGridSpec(
            num_scalar_prefetch=0,
            grid=(B, n_tiles),
            in_specs=[
                # main hop tile (no overlap -> waveform read exactly once)
                pl.BlockSpec((1, HOP_LENGTH, tm), lambda b, t: (b, 0, t)),
                # lane-aligned tail fetch: the 2 hops spilling past the tile
                pl.BlockSpec((1, HOP_LENGTH, TAIL_LANES),
                             lambda b, t: (b, 0, (t + 1) * tiles_per_tail)),
                # constant operands: single-buffered (never re-fetched)
                pl.BlockSpec((2 * N_BINS, HOP_LENGTH), const_map, pipeline_mode=pl.Buffered(1)),
                pl.BlockSpec((2 * N_BINS, HOP_LENGTH), const_map, pipeline_mode=pl.Buffered(1)),
                pl.BlockSpec((2 * N_BINS, REM), const_map, pipeline_mode=pl.Buffered(1)),
                pl.BlockSpec((N_MELS, N_BINS), const_map, pipeline_mode=pl.Buffered(1)),
                pl.BlockSpec((N_MFCC, N_MELS), const_map, pipeline_mode=pl.Buffered(1)),
            ],
            out_specs=pl.BlockSpec((1, N_MFCC, tm), lambda b, t: (b, 0, t)),
            scratch_shapes=[pltpu.VMEM((HOP_LENGTH, tm + TAIL_LANES), DFT_DTYPE)],
        ),
        compiler_params=pltpu.CompilerParams(
            dimension_semantics=("parallel", "parallel")),
        cost_estimate=cost,
    )(w_hop, w_hop, d1, d2, d3, mel_t, dct_t)

    out = out[:, :, :m]                                                      # drop padded frames
    if has_channel:
        out = out[:, None]                                                   # (B, 1, n_mfcc, m)
    return out


# ----------------------------- demo ----------------------------------------------------
if __name__ == "__main__":
    key = jax.random.PRNGKey(0)
    B, T = 2, 1600                       # 0.1 s at 16 kHz -> 8 frames
    waveform = jax.random.normal(key, (B, T), dtype=jnp.float32)

    mfcc = kaldi_mfcc(waveform)
    jax.block_until_ready(mfcc)

    expected_frames = 1 + (T - WIN_LENGTH) // HOP_LENGTH
    assert mfcc.shape == (B, N_MFCC, expected_frames), mfcc.shape
    assert bool(jnp.all(jnp.isfinite(mfcc)))

    # precision-matched pure-JAX reference (same dtypes / fused matrices) to validate the
    # hop-major decomposition, index maps and shifted slices.
    idx = np.arange(WIN_LENGTH)[:, None] + HOP_LENGTH * np.arange(expected_frames)[None, :]
    frames = waveform[:, idx].astype(DFT_DTYPE)                              # (B, win, m)
    dft_full = jnp.asarray(_fused_dft_matrix(), dtype=DFT_DTYPE)             # (512, win)
    spec = jnp.einsum("kw,bwm->bkm", dft_full, frames,
                      preferred_element_type=jnp.float32)
    power = spec[:, :N_BINS] ** 2 + spec[:, N_BINS:] ** 2
    mel = jnp.einsum("ck,bkm->bcm", jnp.asarray(_mel_banks_t()), power,
                     preferred_element_type=jnp.float32)
    logmel = jnp.log(jnp.maximum(mel, EPS))
    ref = jnp.einsum("nc,bcm->bnm", jnp.asarray(_dct_lifter_t()), logmel,
                     preferred_element_type=jnp.float32)
    err = float(jnp.max(jnp.abs(mfcc - ref)))
    assert err < 0.1, f"max abs err vs reference = {err}"

    print("KERNEL_OK")
</pallas_src>

<mosaic_0001>
module attributes {stable_mosaic.version = 11 : i64} {
  func.func @_mfcc_kernel(%arg0: i32, %arg1: i32, %arg2: memref<1x160x128xbf16, #tpu.memory_space<vmem>>, %arg3: memref<1x160x128xbf16, #tpu.memory_space<vmem>>, %arg4: memref<512x160xbf16, #tpu.memory_space<vmem>>, %arg5: memref<512x160xbf16, #tpu.memory_space<vmem>>, %arg6: memref<512x80xbf16, #tpu.memory_space<vmem>>, %arg7: memref<23x256xf32, #tpu.memory_space<vmem>>, %arg8: memref<13x23xf32, #tpu.memory_space<vmem>>, %arg9: memref<1x13x128xf32, #tpu.memory_space<vmem>>, %arg10: memref<160x256xbf16, #tpu.memory_space<vmem>>) attributes {dimension_semantics = [#tpu.dimension_semantics<parallel>, #tpu.dimension_semantics<parallel>], iteration_bounds = array<i64: 2, 1>, scalar_prefetch = 0 : i64, scratch_operands = 1 : i64, tpu.core_type = #tpu.core_type<tc>, window_params = [{transform_indices = @transform_0, window_bounds = array<i64: 1, 160, 128>}, {transform_indices = @transform_1, window_bounds = array<i64: 1, 160, 128>}, {pipeline_mode = #tpu.pipeline_mode<synchronous>, transform_indices = @transform_2, window_bounds = array<i64: 512, 160>}, {pipeline_mode = #tpu.pipeline_mode<synchronous>, transform_indices = @transform_3, window_bounds = array<i64: 512, 160>}, {pipeline_mode = #tpu.pipeline_mode<synchronous>, transform_indices = @transform_4, window_bounds = array<i64: 512, 80>}, {pipeline_mode = #tpu.pipeline_mode<synchronous>, transform_indices = @transform_5, window_bounds = array<i64: 23, 256>}, {pipeline_mode = #tpu.pipeline_mode<synchronous>, transform_indices = @transform_6, window_bounds = array<i64: 13, 23>}, {transform_indices = @transform_7, window_bounds = array<i64: 1, 13, 128>}]} {
    %c0 = arith.constant 0 : index
    %c0_0 = arith.constant 0 : index
    %c0_1 = arith.constant 0 : index
    %0 = vector.load %arg2[%c0, %c0_0, %c0_1] : memref<1x160x128xbf16, #tpu.memory_space<vmem>>, vector<1x160x128xbf16>
    %1 = vector.shape_cast %0 : vector<1x160x128xbf16> to vector<160x128xbf16>
    %c0_2 = arith.constant 0 : index
    %c0_3 = arith.constant 0 : index
    %2 = vector.load %arg10[%c0_2, %c0_3] : memref<160x256xbf16, #tpu.memory_space<vmem>>, vector<160x128xbf16>
    tpu.vector_store %arg10[%c0_2, %c0_3], %1 {strides = array<i32>} : memref<160x256xbf16, #tpu.memory_space<vmem>>, vector<160x128xbf16>,
    %c0_4 = arith.constant 0 : index
    %c0_5 = arith.constant 0 : index
    %c0_6 = arith.constant 0 : index
    %3 = vector.load %arg3[%c0_4, %c0_5, %c0_6] : memref<1x160x128xbf16, #tpu.memory_space<vmem>>, vector<1x160x128xbf16>
    %4 = vector.shape_cast %3 : vector<1x160x128xbf16> to vector<160x128xbf16>
    %c0_7 = arith.constant 0 : index
    %c128 = arith.constant 128 : index
    %5 = vector.load %arg10[%c0_7, %c128] : memref<160x256xbf16, #tpu.memory_space<vmem>>, vector<160x128xbf16>
    tpu.vector_store %arg10[%c0_7, %c128], %4 {strides = array<i32>} : memref<160x256xbf16, #tpu.memory_space<vmem>>, vector<160x128xbf16>,
    %c0_8 = arith.constant 0 : index
    %c0_9 = arith.constant 0 : index
    %6 = vector.load %arg4[%c0_8, %c0_9] : memref<512x160xbf16, #tpu.memory_space<vmem>>, vector<512x160xbf16>
    %cst = arith.constant dense<0.000000e+00> : vector<512x128xf32>
    %7 = tpu.matmul %6, %1, %cst {dimension_numbers = #tpu.dot_dimension_numbers<[1], [0], [0], [1], [0, 0, 1, 1], [], []>} : vector<512x160xbf16>, vector<160x128xbf16>, vector<512x128xf32> -> vector<512x128xf32>
    %c0_10 = arith.constant 0 : index
    %c0_11 = arith.constant 0 : index
    %8 = vector.load %arg5[%c0_10, %c0_11] : memref<512x160xbf16, #tpu.memory_space<vmem>>, vector<512x160xbf16>
    %c0_12 = arith.constant 0 : index
    %c1 = arith.constant 1 : index
    %9 = vector.load %arg10[%c0_12, %c1] : memref<160x256xbf16, #tpu.memory_space<vmem>>, vector<160x128xbf16>
    %cst_13 = arith.constant dense<0.000000e+00> : vector<512x128xf32>
    %10 = tpu.matmul %8, %9, %cst_13 {dimension_numbers = #tpu.dot_dimension_numbers<[1], [0], [0], [1], [0, 0, 1, 1], [], []>} : vector<512x160xbf16>, vector<160x128xbf16>, vector<512x128xf32> -> vector<512x128xf32>
    %11 = arith.addf %7, %10 : vector<512x128xf32>
    %c0_14 = arith.constant 0 : index
    %c0_15 = arith.constant 0 : index
    %12 = vector.load %arg6[%c0_14, %c0_15] : memref<512x80xbf16, #tpu.memory_space<vmem>>, vector<512x80xbf16>
    %c0_16 = arith.constant 0 : index
    %c2 = arith.constant 2 : index
    %13 = vector.load %arg10[%c0_16, %c2] : memref<160x256xbf16, #tpu.memory_space<vmem>>, vector<80x128xbf16>
    %cst_17 = arith.constant dense<0.000000e+00> : vector<512x128xf32>
    %14 = tpu.matmul %12, %13, %cst_17 {dimension_numbers = #tpu.dot_dimension_numbers<[1], [0], [0], [1], [0, 0, 1, 1], [], []>} : vector<512x80xbf16>, vector<80x128xbf16>, vector<512x128xf32> -> vector<512x128xf32>
    %15 = arith.addf %11, %14 : vector<512x128xf32>
    %16 = vector.extract_strided_slice %15 {offsets = [0, 0], sizes = [256, 128], strides = [1, 1]} : vector<512x128xf32> to vector<256x128xf32>
    %17 = vector.extract_strided_slice %15 {offsets = [256, 0], sizes = [256, 128], strides = [1, 1]} : vector<512x128xf32> to vector<256x128xf32>
    %18 = arith.mulf %16, %16 : vector<256x128xf32>
    %19 = arith.mulf %17, %17 : vector<256x128xf32>
    %20 = arith.addf %18, %19 : vector<256x128xf32>
    %c0_18 = arith.constant 0 : index
    %c0_19 = arith.constant 0 : index
    %21 = vector.load %arg7[%c0_18, %c0_19] : memref<23x256xf32, #tpu.memory_space<vmem>>, vector<23x256xf32>
    %cst_20 = arith.constant dense<0.000000e+00> : vector<23x128xf32>
    %22 = tpu.matmul %21, %20, %cst_20 {dimension_numbers = #tpu.dot_dimension_numbers<[1], [0], [0], [1], [0, 0, 1, 1], [], []>} : vector<23x256xf32>, vector<256x128xf32>, vector<23x128xf32> -> vector<23x128xf32>
    %cst_21 = arith.constant 1.1920929E-7 : f32
    %23 = vector.broadcast %cst_21 : f32 to vector<23x128xf32>
    %24 = arith.maximumf %22, %23 : vector<23x128xf32>
    %25 = math.log %24 : vector<23x128xf32>
    %c0_22 = arith.constant 0 : index
    %c0_23 = arith.constant 0 : index
    %26 = vector.load %arg8[%c0_22, %c0_23] : memref<13x23xf32, #tpu.memory_space<vmem>>, vector<13x23xf32>
    %cst_24 = arith.constant dense<0.000000e+00> : vector<13x128xf32>
    %27 = tpu.matmul %26, %25, %cst_24 {dimension_numbers = #tpu.dot_dimension_numbers<[1], [0], [0], [1], [0, 0, 1, 1], [], []>} : vector<13x23xf32>, vector<23x128xf32>, vector<13x128xf32> -> vector<13x128xf32>
    %c0_25 = arith.constant 0 : index
    %c0_26 = arith.constant 0 : index
    %c0_27 = arith.constant 0 : index
    %28 = vector.load %arg9[%c0_25, %c0_26, %c0_27] : memref<1x13x128xf32, #tpu.memory_space<vmem>>, vector<1x13x128xf32>
    %29 = vector.shape_cast %28 : vector<1x13x128xf32> to vector<13x128xf32>
    %30 = vector.shape_cast %27 : vector<13x128xf32> to vector<1x13x128xf32>
    tpu.vector_store %arg9[%c0_25, %c0_26, %c0_27], %30 {strides = array<i32>} : memref<1x13x128xf32, #tpu.memory_space<vmem>>, vector<1x13x128xf32>,
    return
  }
  func.func @transform_0(%arg0: i32, %arg1: i32) -> (i32, i32, i32) {
    %c0_i32 = arith.constant 0 : i32
    %c0_i32_0 = arith.constant 0 : i32
    return %arg0, %c0_i32, %arg1 : i32, i32, i32
  }
  func.func @transform_1(%arg0: i32, %arg1: i32) -> (i32, i32, i32) {
    %c1_i32 = arith.constant 1 : i32
    %0 = arith.addi %arg1, %c1_i32 : i32
    %c1_i32_0 = arith.constant 1 : i32
    %1 = arith.muli %0, %c1_i32_0 : i32
    %c0_i32 = arith.constant 0 : i32
    %c0_i32_1 = arith.constant 0 : i32
    return %arg0, %c0_i32, %1 : i32, i32, i32
  }
  func.func @transform_2(%arg0: i32, %arg1: i32) -> (i32, i32) {
    %c0_i32 = arith.constant 0 : i32
    %c0_i32_0 = arith.constant 0 : i32
    %c0_i32_1 = arith.constant 0 : i32
    return %c0_i32, %c0_i32_0 : i32, i32
  }
  func.func @transform_3(%arg0: i32, %arg1: i32) -> (i32, i32) {
    %c0_i32 = arith.constant 0 : i32
    %c0_i32_0 = arith.constant 0 : i32
    %c0_i32_1 = arith.constant 0 : i32
    return %c0_i32, %c0_i32_0 : i32, i32
  }
  func.func @transform_4(%arg0: i32, %arg1: i32) -> (i32, i32) {
    %c0_i32 = arith.constant 0 : i32
    %c0_i32_0 = arith.constant 0 : i32
    %c0_i32_1 = arith.constant 0 : i32
    return %c0_i32, %c0_i32_0 : i32, i32
  }
  func.func @transform_5(%arg0: i32, %arg1: i32) -> (i32, i32) {
    %c0_i32 = arith.constant 0 : i32
    %c0_i32_0 = arith.constant 0 : i32
    %c0_i32_1 = arith.constant 0 : i32
    return %c0_i32, %c0_i32_0 : i32, i32
  }
  func.func @transform_6(%arg0: i32, %arg1: i32) -> (i32, i32) {
    %c0_i32 = arith.constant 0 : i32
    %c0_i32_0 = arith.constant 0 : i32
    %c0_i32_1 = arith.constant 0 : i32
    return %c0_i32, %c0_i32_0 : i32, i32
  }
  func.func @transform_7(%arg0: i32, %arg1: i32) -> (i32, i32, i32) {
    %c0_i32 = arith.constant 0 : i32
    %c0_i32_0 = arith.constant 0 : i32
    return %arg0, %c0_i32, %arg1 : i32, i32, i32
  }
}

</mosaic_0001>

<bundles_post_ra>
// kernel: tpu_custom_call.1
= control target key start
LH: loop header
LB: loop body
LE: loop exit
PB: predicated region body
PF: predicated region fallthrough
CT: control target
= control target key end

     0   :  { %s4429_s24 = smov 0   ;;  %s4431_s25 = smov 0   ;;  %s5808_s0 = inlined_call_operand.vmem [shape: bf16[2,160,256], index: 0, kind: input, shape index: {}]   ;;  %s5809_s1 = inlined_call_operand.vmem [shape: bf16[2,160,256], index: 1, kind: input, shape index: {}]   ;;  %s5810_s2 = inlined_call_operand.vmem [shape: bf16[512,160], index: 2, kind: input, shape index: {}]   ;;  %s5811_s3 = inlined_call_operand.vmem [shape: bf16[512,160], index: 3, kind: input, shape index: {}]   ;;  %s5812_s4 = inlined_call_operand.vmem [shape: bf16[512,80], index: 4, kind: input, shape index: {}]   ;;  %s5813_s5 = inlined_call_operand.vmem [shape: f32[23,256], index: 5, kind: input, shape index: {}]   ;;  %s5814_s6 = inlined_call_operand.vmem [shape: f32[13,23], index: 6, kind: input, shape index: {}]   ;;  %s5815_s7 = inlined_call_operand.vmem [shape: f32[2,13,128], index: 7, kind: output, shape index: {}]  }
   0x1   :  { %s4433_s26 = smov 0   ;;  %s4435_s27 = smov 0  }
   0x2   :  { %s4437_s28 = smov 0  }
   0x3 LB: > { %s29_s29 = sadd.s32 1, %s4380_s27  ;;  %p45_p1 = scmp.ne.s32.totalorder %s4372_s25, %s4368_s24  ;;  %s4384_s28 = sphi %s4437_s28, %s17_s28   ;;  %s4380_s27 = sphi %s4435_s27, %s5849_s27   ;;  %s4376_s26 = sphi %s4433_s26, %s5848_s26   ;;  %s4372_s25 = sphi %s4431_s25, %s5847_s25   ;;  %s4368_s24 = sphi %s4429_s24, %s5846_s24  }
   0x4   : > { %p31_p0 = scmp.ge.s32.totalorder %s29_s29, 2  ;;  %p46_p2 = scmp.eq.s32.totalorder %s4384_s28, 0 }
   0x5   : > { %s38_s9 = sadd.s32 1, %s4372_s25  ;;  %p3437_p5 = scmp.ge.s32.totalorder %s4384_s28, 2 }
   0x6   : > { %s5851_s29 = smov (%p31_p0, %s29_s29), 0  ;;  %p4460_p3 = por %p46_p2, %p45_p1 }
   0x7   : > { %s33_s8 = ssub.s32 %s4380_s27, %s5851_s29  ;;  %249 = sbr.rel (%p3437_p5) target bundleno = 50 (0x32), region = 36 }
   0x8   : > { %p36_p4 = scmp.eq.s32.totalorder %s33_s8, 0 }
   0xa   : > { %s4468_s10 = scalar_select %p36_p4, %s4372_s25, %s38_s9  }
   0xe   : > { %252 = sbr.rel (!%p4460_p3) target bundleno = 32 (0x20), region = 40  ;;  %s254_s11 = sand.u32 (%p4460_p3), 1, %s4372_s25  }
   0xf   : > { %s4050_s12 = smul.u32 (%p4460_p3), 160, %s4380_s27 }
  0x10   : > { %s4049_s13 = smul.u32 (%p4460_p3), 80, %s254_s11 }
  0x11   : > { %s4478_s16 = scalar_lea.vmem (%p4460_p3), %s5808_s0, %s4050_s12 }
  0x12   : > { %v276_v0 = vld [vmem:[%s4478_s16] sm:$0xf] (%p4460_p3)  ;;  %v278_v1 = vld [vmem:[%s4478_s16 + $0x8] sm:$0xf] (%p4460_p3)  ;;  %s4482_s17 = scalar_lea.vmem (%p4460_p3), [#allocation3], %s4049_s13 }
  0x13   : > { %277 = vst [vmem:[%s4482_s17] sm:$0xf] (%p4460_p3), %v276_v0  ;;  %279 = vst [vmem:[%s4482_s17 + $0x4] sm:$0xf] (%p4460_p3), %v278_v1  ;;  %v280_v2 = vld [vmem:[%s4478_s16 + $0x10] sm:$0xf] (%p4460_p3) }
  0x14   : > { %v282_v3 = vld [vmem:[%s4478_s16 + $0x18] sm:$0xf] (%p4460_p3)  ;;  %v284_v4 = vld [vmem:[%s4478_s16 + $0x20] sm:$0xf] (%p4460_p3)  ;;  %281 = vst [vmem:[%s4482_s17 + $0x8] sm:$0xf] (%p4460_p3), %v280_v2 }
  0x15   : > { %283 = vst [vmem:[%s4482_s17 + $0xc] sm:$0xf] %v282_v3  ;;  %285 = vst [vmem:[%s4482_s17 + $0x10] sm:$0xf] %v284_v4  ;;  %v286_v5 = vld [vmem:[%s4478_s16 + $0x28] sm:$0xf] }
  0x16   : > { %v288_v6 = vld [vmem:[%s4478_s16 + $0x30] sm:$0xf]  ;;  %v290_v7 = vld [vmem:[%s4478_s16 + $0x38] sm:$0xf]  ;;  %287 = vst [vmem:[%s4482_s17 + $0x14] sm:$0xf] %v286_v5 }
  0x17   : > { %289 = vst [vmem:[%s4482_s17 + $0x18] sm:$0xf] %v288_v6  ;;  %291 = vst [vmem:[%s4482_s17 + $0x1c] sm:$0xf] %v290_v7  ;;  %v292_v8 = vld [vmem:[%s4478_s16 + $0x40] sm:$0xf] }
  0x18   : > { %v294_v9 = vld [vmem:[%s4478_s16 + $0x48] sm:$0xf]  ;;  %v296_v10 = vld [vmem:[%s4478_s16 + $0x50] sm:$0xf]  ;;  %293 = vst [vmem:[%s4482_s17 + $0x20] sm:$0xf] %v292_v8 }
  0x19   : > { %295 = vst [vmem:[%s4482_s17 + $0x24] sm:$0xf] %v294_v9  ;;  %297 = vst [vmem:[%s4482_s17 + $0x28] sm:$0xf] %v296_v10  ;;  %v298_v11 = vld [vmem:[%s4478_s16 + $0x58] sm:$0xf] }
  0x1a   : > { %v300_v12 = vld [vmem:[%s4478_s16 + $0x60] sm:$0xf]  ;;  %v302_v13 = vld [vmem:[%s4478_s16 + $0x68] sm:$0xf]  ;;  %299 = vst [vmem:[%s4482_s17 + $0x2c] sm:$0xf] %v298_v11 }
  0x1b   : > { %301 = vst [vmem:[%s4482_s17 + $0x30] sm:$0xf] %v300_v12  ;;  %303 = vst [vmem:[%s4482_s17 + $0x34] sm:$0xf] %v302_v13  ;;  %v304_v14 = vld [vmem:[%s4478_s16 + $0x70] sm:$0xf] }
  0x1c   : > { %v306_v15 = vld [vmem:[%s4478_s16 + $0x78] sm:$0xf]  ;;  %v308_v16 = vld [vmem:[%s4478_s16 + $0x80] sm:$0xf]  ;;  %305 = vst [vmem:[%s4482_s17 + $0x38] sm:$0xf] %v304_v14 }
  0x1d   : > { %307 = vst [vmem:[%s4482_s17 + $0x3c] sm:$0xf] %v306_v15  ;;  %309 = vst [vmem:[%s4482_s17 + $0x40] sm:$0xf] %v308_v16  ;;  %v310_v17 = vld [vmem:[%s4478_s16 + $0x88] sm:$0xf] }
  0x1e   : > { %v312_v18 = vld [vmem:[%s4478_s16 + $0x90] sm:$0xf]  ;;  %v314_v19 = vld [vmem:[%s4478_s16 + $0x98] sm:$0xf]  ;;  %311 = vst [vmem:[%s4482_s17 + $0x44] sm:$0xf] %v310_v17 }
  0x1f   : > { %313 = vst [vmem:[%s4482_s17 + $0x48] sm:$0xf] %v312_v18  ;;  %315 = vst [vmem:[%s4482_s17 + $0x4c] sm:$0xf] %v314_v19 }
  0x20 PF: > { %378 = sbr.rel (!%p4460_p3) target bundleno = 50 (0x32), region = 81  ;;  %s380_s18 = sand.u32 (%p4460_p3), 1, %s4372_s25  }
  0x21   : > { %s3439_s19 = smul.u32 (%p4460_p3), 160, %s4380_s27 }
  0x22   : > { %s4051_s20 = smul.u32 (%p4460_p3), 80, %s380_s18 }
  0x23   : > { %s4529_s23 = scalar_lea.vmem (%p4460_p3), %s5809_s1, %s3439_s19 }
  0x24   : > { %v3440_v20 = vld [vmem:[%s4529_s23 + $0x4] sm:$0xf] (%p4460_p3)  ;;  %v3441_v21 = vld [vmem:[%s4529_s23 + $0xc] sm:$0xf] (%p4460_p3)  ;;  %s4533_s30 = scalar_lea.vmem (%p4460_p3), [#allocation4], %s4051_s20 }
  0x25   : > { %404 = vst [vmem:[%s4533_s30] sm:$0xf] (%p4460_p3), %v3440_v20  ;;  %406 = vst [vmem:[%s4533_s30 + $0x4] sm:$0xf] (%p4460_p3), %v3441_v21  ;;  %v3442_v22 = vld [vmem:[%s4529_s23 + $0x14] sm:$0xf] (%p4460_p3) }
  0x26   : > { %v3443_v23 = vld [vmem:[%s4529_s23 + $0x1c] sm:$0xf] (%p4460_p3)  ;;  %v3444_v24 = vld [vmem:[%s4529_s23 + $0x24] sm:$0xf] (%p4460_p3)  ;;  %408 = vst [vmem:[%s4533_s30 + $0x8] sm:$0xf] (%p4460_p3), %v3442_v22 }
  0x27   : > { %410 = vst [vmem:[%s4533_s30 + $0xc] sm:$0xf] %v3443_v23  ;;  %412 = vst [vmem:[%s4533_s30 + $0x10] sm:$0xf] %v3444_v24  ;;  %v3445_v25 = vld [vmem:[%s4529_s23 + $0x2c] sm:$0xf] }
  0x28   : > { %v3446_v26 = vld [vmem:[%s4529_s23 + $0x34] sm:$0xf]  ;;  %v3447_v27 = vld [vmem:[%s4529_s23 + $0x3c] sm:$0xf]  ;;  %414 = vst [vmem:[%s4533_s30 + $0x14] sm:$0xf] %v3445_v25 }
  0x29   : > { %416 = vst [vmem:[%s4533_s30 + $0x18] sm:$0xf] %v3446_v26  ;;  %418 = vst [vmem:[%s4533_s30 + $0x1c] sm:$0xf] %v3447_v27  ;;  %v3448_v28 = vld [vmem:[%s4529_s23 + $0x44] sm:$0xf] }
  0x2a   : > { %v3449_v29 = vld [vmem:[%s4529_s23 + $0x4c] sm:$0xf]  ;;  %v3450_v30 = vld [vmem:[%s4529_s23 + $0x54] sm:$0xf]  ;;  %420 = vst [vmem:[%s4533_s30 + $0x20] sm:$0xf] %v3448_v28 }
  0x2b   : > { %422 = vst [vmem:[%s4533_s30 + $0x24] sm:$0xf] %v3449_v29  ;;  %424 = vst [vmem:[%s4533_s30 + $0x28] sm:$0xf] %v3450_v30  ;;  %v3451_v31 = vld [vmem:[%s4529_s23 + $0x5c] sm:$0xf] }
  0x2c   : > { %v3452_v32 = vld [vmem:[%s4529_s23 + $0x64] sm:$0xf]  ;;  %v3453_v33 = vld [vmem:[%s4529_s23 + $0x6c] sm:$0xf]  ;;  %426 = vst [vmem:[%s4533_s30 + $0x2c] sm:$0xf] %v3451_v31 }
  0x2d   : > { %428 = vst [vmem:[%s4533_s30 + $0x30] sm:$0xf] %v3452_v32  ;;  %430 = vst [vmem:[%s4533_s30 + $0x34] sm:$0xf] %v3453_v33  ;;  %v3454_v34 = vld [vmem:[%s4529_s23 + $0x74] sm:$0xf] }
  0x2e   : > { %v3455_v35 = vld [vmem:[%s4529_s23 + $0x7c] sm:$0xf]  ;;  %v3456_v36 = vld [vmem:[%s4529_s23 + $0x84] sm:$0xf]  ;;  %432 = vst [vmem:[%s4533_s30 + $0x38] sm:$0xf] %v3454_v34 }
  0x2f   : > { %434 = vst [vmem:[%s4533_s30 + $0x3c] sm:$0xf] %v3455_v35  ;;  %436 = vst [vmem:[%s4533_s30 + $0x40] sm:$0xf] %v3456_v36  ;;  %v3457_v37 = vld [vmem:[%s4529_s23 + $0x8c] sm:$0xf] }
  0x30   : > { %v3458_v38 = vld [vmem:[%s4529_s23 + $0x94] sm:$0xf]  ;;  %v3459_v39 = vld [vmem:[%s4529_s23 + $0x9c] sm:$0xf]  ;;  %438 = vst [vmem:[%s4533_s30 + $0x44] sm:$0xf] %v3457_v37 }
  0x31   : > { %440 = vst [vmem:[%s4533_s30 + $0x48] sm:$0xf] %v3458_v38  ;;  %442 = vst [vmem:[%s4533_s30 + $0x4c] sm:$0xf] %v3459_v39 }
  0x32 PF: > { %p3460_p6 = scmp.ge.s32.totalorder %s4384_s28, 1  ;;  %p504_p7 = scmp.lt.s32.totalorder %s4384_s28, 3 }
  0x34   : > { %p505_p8 = pnand %p3460_p6, %p504_p7 }
  0x36   : > { %508 = sbr.rel (%p505_p8) target bundleno = 1229 (0x4cd), region = 122 }
  0x3d   : > { %s511_s8 = sand.u32 1, %s4368_s24   ;;  %v4386_v40 = vmov 0   ;;  %s4387_s12 = smov 127   ;;  %v4118_v59 = vld [vmem:[%s5811_s3 + $0x4] ss:$8 sps:$4 sm:$0xff]   ;;  %vm1263_vm0 = vcmask 261120  }
  0x3e   : > { %s4052_s9 = smul.u32 80, %s511_s8  ;;  %1360 = vmatprep.subr.bf16.mxu0 %v4386_v40  ;;  %3947 = vmatprep.subr.bf16.mxu1 %v4386_v40  ;;  %v4121_v60 = vld [vmem:[%s5811_s3 + $0x94] ss:$8 sps:$4 sm:$0xff]   ;;  %s4388_s17 = smov 126   ;;  %vm1242_vm1 = vcmask 1039360   ;;  %vm2586_vm2 = vcmask 1031168  }
  0x3f   : > { %3547 = vmatprep.mubr.msk.bf16.mxu0 %vm1263_vm0, %v4118_v59  ;;  %3556 = vmatprep.mubr.msk.bf16.mxu1 %vm1263_vm0, %v4121_v60  ;;  %v4116_v31 = vld [vmem:[%s5811_s3] ss:$8 sps:$4 sm:$0xff]   ;;  %v4119_v32 = vld [vmem:[%s5811_s3 + $0x90] ss:$8 sps:$4 sm:$0xff]   ;;  %v4122_v34 = vld [vmem:[%s5811_s3 + $0x14] ss:$8 sps:$4 sm:$0xff]  }
  0x40   : > { %s4578_s11 = scalar_lea.vmem [#allocation3], %s4052_s9  ;;  %s4588_s24 = scalar_lea.vmem [#allocation4], %s4052_s9  ;;  %v4124_v35 = vld [vmem:[%s5811_s3 + $0xa4] ss:$8 sps:$4 sm:$0xff]   ;;  %v4126_v39 = vld [vmem:[%s5811_s3 + $0x10] ss:$8 sps:$4 sm:$0xff]  }
  0x41   : > { %v4581_v41 = vld [vmem:[%s4578_s11 + $0x8] sm:$0xff]   ;;  %v4584_v42 = vld [vmem:[%s4578_s11] sm:$0xff]   ;;  %v4100_v45 = vld [vmem:[%s4588_s24 + $0x10] sm:$0xff]   ;;  %vm2597_vm3 = vcmask 654336   ;;  %vm3240_vm4 = vcmask 187392   ;;  %vm3247_vm5 = vcmask 1046528  }
  0x42   : > { %1206 = vrot.lane.b32.xlu1 %v4581_v41, %s4387_s12  ;;  %v4098_v43 = vld [vmem:[%s4588_s24 + $0x8] sm:$0xff]   ;;  %1202 = vrot.lane.b32.xlu0 %v4584_v42, %s4387_s12  ;;  %v4099_v44 = vld [vmem:[%s4588_s24] sm:$0xff]   ;;  %p557_p9 = scmp.lt.s32.totalorder %s4376_s26, 1 }
  0x43   : > { %v4598_v46 = vld [vmem:[%s4578_s11 + $0x10] sm:$0xff]   ;;  %v4102_v47 = vld [vmem:[%s4588_s24 + $0x18] sm:$0xff]   ;;  %v4104_v49 = vld [vmem:[%s4588_s24 + $0x20] sm:$0xff]  }
  0x44   : > { %v4605_v48 = vld [vmem:[%s4578_s11 + $0x18] sm:$0xff]   ;;  %v4612_v50 = vld [vmem:[%s4578_s11 + $0x20] sm:$0xff]   ;;  %v4106_v51 = vld [vmem:[%s4588_s24 + $0x28] sm:$0xff]   ;;  %s5853_s26 = smov (!%p557_p9, %s4376_s26), 1 }
  0x45   : > { %v4619_v52 = vld [vmem:[%s4578_s11 + $0x28] sm:$0xff]   ;;  %v4108_v53 = vld [vmem:[%s4588_s24 + $0x30] sm:$0xff]   ;;  %v4110_v55 = vld [vmem:[%s4588_s24 + $0x38] sm:$0xff]  }
  0x46   : > { %1208 = vrot.lane.b32.xlu1 %v4098_v43, %s4387_s12  ;;  %1204 = vrot.lane.b32.xlu0 %v4099_v44, %s4387_s12  ;;  %v4623_v54 = vld [vmem:[%s4578_s11 + $0x30] sm:$0xff]   ;;  %v4630_v56 = vld [vmem:[%s4578_s11 + $0x38] sm:$0xff]  }
  0x47   : > { %v4112_v57 = vld [vmem:[%s4588_s24 + $0x40] sm:$0xff]   ;;  %v4114_v61 = vld [vmem:[%s4588_s24 + $0x48] sm:$0xff]  }
  0x48   : > { %v4640_v58 = vld [vmem:[%s4578_s11 + $0x40] sm:$0xff]   ;;  %v4655_v62 = vld [vmem:[%s4578_s11 + $0x48] sm:$0xff]   ;;  %s3744_s11 = sshll.u32 %s5853_s26, 4 }
  0x49   : > { %v4150_v60 = vld [vmem:[%s5811_s3 + $0x50] ss:$8 sps:$4 sm:$0xff]   ;;  %s564_s13 = scalar_lea.vmem %s5815_s7, %s3744_s11 }
  0x4a   : > { %1212 = vrot.lane.b32.xlu1 %v4100_v45, %s4387_s12  ;;  %1210 = vrot.lane.b32.xlu0 %v4598_v46, %s4387_s12 }
  0x4e   : > { %1216 = vrot.lane.b32.xlu1 %v4102_v47, %s4387_s12  ;;  %1214 = vrot.lane.b32.xlu0 %v4605_v48, %s4387_s12 }
  0x52   : > { %1220 = vrot.lane.b32.xlu1 %v4104_v49, %s4387_s12  ;;  %1218 = vrot.lane.b32.xlu0 %v4612_v50, %s4387_s12 }
  0x56   : > { %1224 = vrot.lane.b32.xlu1 %v4106_v51, %s4387_s12  ;;  %1222 = vrot.lane.b32.xlu0 %v4619_v52, %s4387_s12  ;;  %v4140_v51 = vld [vmem:[%s5811_s3 + $0x44] ss:$8 sps:$4 sm:$0xff]  }
  0x5a   : > { %1228 = vrot.lane.b32.xlu1 %v4108_v53, %s4387_s12  ;;  %1226 = vrot.lane.b32.xlu0 %v4623_v54, %s4387_s12  ;;  %v4142_v53 = vld [vmem:[%s5811_s3 + $0xd4] ss:$8 sps:$4 sm:$0xff]  }
  0x5e   : > { %1232 = vrot.lane.b32.xlu1 %v4110_v55, %s4387_s12  ;;  %1230 = vrot.lane.b32.xlu0 %v4630_v56, %s4387_s12  ;;  %v4146_v55 = vld [vmem:[%s5811_s3 + $0x54] ss:$8 sps:$4 sm:$0xff]  }
  0x62   : > { %1236 = vrot.lane.b32.xlu1 %v4112_v57, %s4387_s12  ;;  %1234 = vrot.lane.b32.xlu0 %v4640_v58, %s4387_s12  ;;  %v4148_v57 = vld [vmem:[%s5811_s3 + $0xe4] ss:$8 sps:$4 sm:$0xff]  }
  0x66   : > { %1240 = vrot.lane.b32.xlu1 %v4114_v61, %s4387_s12  ;;  %1238 = vrot.lane.b32.xlu0 %v4655_v62, %s4387_s12  ;;  %v4152_v61 = vld [vmem:[%s5811_s3 + $0x64] ss:$8 sps:$4 sm:$0xff]  }
  0x6a   : > { %2568 = vrot.lane.b32.xlu1 %v4099_v44, %s4388_s17  ;;  %2566 = vrot.lane.b32.xlu0 %v4584_v42, %s4388_s17  ;;  %v4128_v44 = vld [vmem:[%s5811_s3 + $0x24] ss:$8 sps:$4 sm:$0xff]  }
  0x6e   : > { %2572 = vrot.lane.b32.xlu1 %v4098_v43, %s4388_s17  ;;  %2570 = vrot.lane.b32.xlu0 %v4581_v41, %s4388_s17  ;;  %v4127_v43 = vld [vmem:[%s5811_s3 + $0xa0] ss:$8 sps:$4 sm:$0xff]  }
  0x72   : > { %2576 = vrot.lane.b32.xlu1 %v4100_v45, %s4388_s17  ;;  %2574 = vrot.lane.b32.xlu0 %v4598_v46, %s4388_s17  ;;  %v4132_v45 = vld [vmem:[%s5811_s3 + $0x20] ss:$8 sps:$4 sm:$0xff]  }
  0x76   : > { %2580 = vrot.lane.b32.xlu1 %v4102_v47, %s4388_s17  ;;  %2578 = vrot.lane.b32.xlu0 %v4605_v48, %s4388_s17  ;;  %v4134_v47 = vld [vmem:[%s5811_s3 + $0x34] ss:$8 sps:$4 sm:$0xff]  }
  0x7a   : > { %2584 = vrot.lane.b32.xlu1 %v4104_v49, %s4388_s17  ;;  %2582 = vrot.lane.b32.xlu0 %v4612_v50, %s4388_s17  ;;  %v4136_v49 = vld [vmem:[%s5811_s3 + $0xc4] ss:$8 sps:$4 sm:$0xff]  }
  0xb4   : > { %v1207_v63 = vpop.permute.xlu1 %1206  ;;  %v1203_v0 = vpop.permute.xlu0 %1202 }
  0xb8   : > { %v1209_v1 = vpop.permute.xlu1 %1208  ;;  %v1205_v2 = vpop.permute.xlu0 %1204 }
  0xb9   : > { %v1243_v3 = vsel %vm1242_vm1, %v1203_v0, %v1205_v2  ;;  %v1244_v6 = vsel %vm1242_vm1, %v1207_v63, %v1209_v1  ;;  %v4156_v2 = vld [vmem:[%s5811_s3 + $0x60] ss:$8 sps:$4 sm:$0xff]  }
  0xba   : > { %1361 = vmatpush1.bf16.msra.mxu0 %v1243_v3  ;;  %3957 = vmatpush1.bf16.msra.mxu1 %v1243_v3  ;;  %v4158_v3 = vld [vmem:[%s5811_s3 + $0x74] ss:$8 sps:$4 sm:$0xff]  }
  0xbb   : > { %1362 = vmatprep.subr.bf16.mxu0 %v4386_v40  ;;  %3948 = vmatprep.subr.bf16.mxu1 %v4386_v40 }
  0xbc   : > { %v1213_v4 = vpop.permute.xlu1 %1212  ;;  %v1211_v5 = vpop.permute.xlu0 %1210 }
  0xbd   : > { %v1245_v7 = vsel %vm1242_vm1, %v1211_v5, %v1213_v4  ;;  %v4160_v4 = vld [vmem:[%s5811_s3 + $0x104] ss:$8 sps:$4 sm:$0xff]  }
  0xbe   : > { %1363 = vmatpush1.bf16.msra.mxu0 %v1244_v6  ;;  %3958 = vmatpush1.bf16.msra.mxu1 %v1244_v6 }
  0xbf   : > { %1364 = vmatprep.subr.bf16.mxu0 %v4386_v40  ;;  %3949 = vmatprep.subr.bf16.mxu1 %v4386_v40 }
  0xc0   : > { %v1217_v8 = vpop.permute.xlu1 %1216  ;;  %v1215_v9 = vpop.permute.xlu0 %1214 }
  0xc1   : > { %v1246_v10 = vsel %vm1242_vm1, %v1215_v9, %v1217_v8  ;;  %v4162_v8 = vld [vmem:[%s5811_s3 + $0x70] ss:$8 sps:$4 sm:$0xff]   ;;  %v4163_v9 = vld [vmem:[%s5811_s3 + $0x100] ss:$8 sps:$4 sm:$0xff]  }
  0xc2   : > { %1365 = vmatpush1.bf16.msra.mxu0 %v1245_v7  ;;  %3959 = vmatpush1.bf16.msra.mxu1 %v1245_v7 }
  0xc3   : > { %1366 = vmatprep.subr.bf16.mxu0 %v4386_v40  ;;  %3950 = vmatprep.subr.bf16.mxu1 %v4386_v40 }
  0xc4   : > { %v1221_v11 = vpop.permute.xlu1 %1220  ;;  %v1219_v12 = vpop.permute.xlu0 %1218 }
  0xc5   : > { %v1247_v13 = vsel %vm1242_vm1, %v1219_v12, %v1221_v11  ;;  %v4166_v11 = vld [vmem:[%s5811_s3 + $0x114] ss:$8 sps:$4 sm:$0xff]   ;;  %v4168_v12 = vld [vmem:[%s5811_s3 + $0x80] ss:$8 sps:$4 sm:$0xff]  }
  0xc6   : > { %1367 = vmatpush1.bf16.msra.mxu0 %v1246_v10  ;;  %3960 = vmatpush1.bf16.msra.mxu1 %v1246_v10  ;;  %v4164_v10 = vld [vmem:[%s5811_s3 + $0x84] ss:$8 sps:$4 sm:$0xff]  }
  0xc7   : > { %1368 = vmatprep.subr.bf16.mxu0 %v4386_v40  ;;  %3951 = vmatprep.subr.bf16.mxu1 %v4386_v40 }
  0xc8   : > { %v1225_v14 = vpop.permute.xlu1 %1224  ;;  %v1223_v15 = vpop.permute.xlu0 %1222 }
  0xc9   : > { %v1248_v16 = vsel %vm1242_vm1, %v1223_v15, %v1225_v14  ;;  %v4170_v14 = vld [vmem:[%s5811_s3 + $0x124] ss:$8 sps:$4 sm:$0xff]  }
  0xca   : > { %1369 = vmatpush1.bf16.msra.mxu0 %v1247_v13  ;;  %3961 = vmatpush1.bf16.msra.mxu1 %v1247_v13  ;;  %v4169_v13 = vld [vmem:[%s5811_s3 + $0x110] ss:$8 sps:$4 sm:$0xff]   ;;  %v4174_v15 = vld [vmem:[%s5810_s2 + $0x4] ss:$8 sps:$4 sm:$0xff]  }
  0xcb   : > { %1370 = vmatprep.subr.bf16.mxu0 %v4386_v40  ;;  %3952 = vmatprep.subr.bf16.mxu1 %v4386_v40 }
  0xcc   : > { %v1229_v17 = vpop.permute.xlu1 %1228  ;;  %v1227_v18 = vpop.permute.xlu0 %1226 }
  0xcd   : > { %v1249_v19 = vsel %vm1242_vm1, %v1227_v18, %v1229_v17  ;;  %v4175_v17 = vld [vmem:[%s5811_s3 + $0x120] ss:$8 sps:$4 sm:$0xff]   ;;  %v4176_v18 = vld [vmem:[%s5811_s3 + $0x134] ss:$8 sps:$4 sm:$0xff]  }
  0xce   : > { %1371 = vmatpush1.bf16.msra.mxu0 %v1248_v16  ;;  %3962 = vmatpush1.bf16.msra.mxu1 %v1248_v16  ;;  %v4172_v16 = vld [vmem:[%s5810_s2] ss:$8 sps:$4 sm:$0xff]  }
  0xcf   : > { %1372 = vmatprep.subr.bf16.mxu0 %v4386_v40  ;;  %3953 = vmatprep.subr.bf16.mxu1 %v4386_v40 }
  0xd0   : > { %v1233_v20 = vpop.permute.xlu1 %1232  ;;  %v1231_v21 = vpop.permute.xlu0 %1230 }
  0xd1   : > { %v1250_v22 = vsel %vm1242_vm1, %v1231_v21, %v1233_v20  ;;  %v4180_v20 = vld [vmem:[%s5811_s3 + $0x130] ss:$8 sps:$4 sm:$0xff]  }
  0xd2   : > { %1373 = vmatpush1.bf16.msra.mxu0 %v1249_v19  ;;  %3963 = vmatpush1.bf16.msra.mxu1 %v1249_v19  ;;  %v4178_v19 = vld [vmem:[%s5810_s2 + $0x14] ss:$8 sps:$4 sm:$0xff]   ;;  %v4181_v21 = vld [vmem:[%s5810_s2 + $0x10] ss:$8 sps:$4 sm:$0xff]  }
  0xd3   : > { %1374 = vmatprep.subr.bf16.mxu0 %v4386_v40  ;;  %3954 = vmatprep.subr.bf16.mxu1 %v4386_v40 }
  0xd4   : > { %v1237_v23 = vpop.permute.xlu1 %1236  ;;  %v1235_v24 = vpop.permute.xlu0 %1234 }
  0xd5   : > { %v1251_v25 = vsel %vm1242_vm1, %v1235_v24, %v1237_v23  ;;  %v4184_v23 = vld [vmem:[%s5810_s2 + $0x24] ss:$8 sps:$4 sm:$0xff]   ;;  %v4186_v24 = vld [vmem:[%s5811_s3 + $0x140] ss:$8 sps:$4 sm:$0xff]  }
  0xd6   : > { %1375 = vmatpush1.bf16.msra.mxu0 %v1250_v22  ;;  %3964 = vmatpush1.bf16.msra.mxu1 %v1250_v22  ;;  %v4182_v22 = vld [vmem:[%s5811_s3 + $0x144] ss:$8 sps:$4 sm:$0xff]  }
  0xd7   : > { %1376 = vmatprep.subr.bf16.mxu0 %v4386_v40  ;;  %3955 = vmatprep.subr.bf16.mxu1 %v4386_v40 }
  0xd8   : > { %v1241_v26 = vpop.permute.xlu1 %1240  ;;  %v1239_v27 = vpop.permute.xlu0 %1238 }
  0xd9   : > { %v1252_v28 = vsel %vm1242_vm1, %v1239_v27, %v1241_v26  ;;  %v4188_v26 = vld [vmem:[%s5811_s3 + $0x154] ss:$8 sps:$4 sm:$0xff]  }
  0xda   : > { %1377 = vmatpush1.bf16.msra.mxu0 %v1251_v25  ;;  %3965 = vmatpush1.bf16.msra.mxu1 %v1251_v25  ;;  %v4187_v25 = vld [vmem:[%s5810_s2 + $0x20] ss:$8 sps:$4 sm:$0xff]   ;;  %v4190_v27 = vld [vmem:[%s5810_s2 + $0x34] ss:$8 sps:$4 sm:$0xff]  }
  0xdb   : > { %1378 = vmatprep.subr.bf16.mxu0 %v4386_v40  ;;  %3956 = vmatprep.subr.bf16.mxu1 %v4386_v40 }
  0xdc   : > { %v2569_v29 = vpop.permute.xlu1 %2568  ;;  %v2567_v30 = vpop.permute.xlu0 %2566 }
  0xdd   : > { %v2587_v33 = vsel %vm2586_vm2, %v2567_v30, %v2569_v29  ;;  %v4193_v29 = vld [vmem:[%s5810_s2 + $0x30] ss:$8 sps:$4 sm:$0xff]   ;;  %v4194_v30 = vld [vmem:[%s5811_s3 + $0x164] ss:$8 sps:$4 sm:$0xff]  }
  0xde   : > { %1379 = vmatpush1.bf16.msra.mxu0 %v1252_v28  ;;  %3966 = vmatpush1.bf16.msra.mxu1 %v1252_v28  ;;  %v4192_v28 = vld [vmem:[%s5811_s3 + $0x150] ss:$8 sps:$4 sm:$0xff]  }
  0xdf   : > { %2033 = vmatprep.subr.bf16.mxu0 %v4386_v40  ;;  %3828 = vmatprep.subr.bf16.mxu1 %v2587_v33 }
  0xe0   : > { %v2573_v36 = vpop.permute.xlu1 %2572  ;;  %v2571_v37 = vpop.permute.xlu0 %2570 }
  0xe1   : > { %1393 = vmatmul.mubr.bf16.vlgmr.msra.gmra.mrb[0].mxu0 %v4116_v31  ;;  %1465 = vmatmul.mubr.bf16.vlgmr.msra.gmra.mrb[0].mxu1 %v4119_v32  ;;  %v2588_v38 = vsel %vm2586_vm2, %v2571_v37, %v2573_v36  ;;  %v4196_v31 = vld [vmem:[%s5810_s2 + $0x44] ss:$8 sps:$4 sm:$0xff]   ;;  %v4198_v32 = vld [vmem:[%s5811_s3 + $0x160] ss:$8 sps:$4 sm:$0xff]   ;;  %v4204_v36 = vld [vmem:[%s5811_s3 + $0x170] ss:$8 sps:$4 sm:$0xff]  }
  0xe2   : > { %3548 = vmatprep.mubr.msk.bf16.mxu0 %vm1263_vm0, %v4122_v34  ;;  %3557 = vmatprep.mubr.msk.bf16.mxu1 %vm1263_vm0, %v4124_v35  ;;  %v4200_v34 = vld [vmem:[%s5811_s3 + $0x174] ss:$8 sps:$4 sm:$0xff]   ;;  %v4205_v37 = vld [vmem:[%s5810_s2 + $0x50] ss:$8 sps:$4 sm:$0xff]  }
  0xe3   : > { %2034 = vmatpush1.bf16.msra.mxu0 %v4584_v42  ;;  %3829 = vmatpush3.bf16.msra.mxu1 %v2587_v33  ;;  %v4130_v42 = vld [vmem:[%s5811_s3 + $0xb4] ss:$8 sps:$4 sm:$0xff]   ;;  %v4199_v33 = vld [vmem:[%s5810_s2 + $0x40] ss:$8 sps:$4 sm:$0xff]  }
  0xe4   : > { %2035 = vmatprep.subr.bf16.mxu0 %v4386_v40  ;;  %3830 = vmatprep.subr.bf16.mxu1 %v2588_v38  ;;  %v2575_v59 = vpop.permute.xlu0 %2574  ;;  %v4202_v35 = vld [vmem:[%s5810_s2 + $0x54] ss:$8 sps:$4 sm:$0xff]  }
  0xe7   : > { %2036 = vmatpush1.bf16.msra.mxu0 %v4581_v41  ;;  %3831 = vmatpush3.bf16.msra.mxu1 %v2588_v38  ;;  %v4133_v41 = vld [vmem:[%s5811_s3 + $0xb0] ss:$8 sps:$4 sm:$0xff]   ;;  %v4206_v38 = vld [vmem:[%s5811_s3 + $0x184] ss:$8 sps:$4 sm:$0xff]  }
  0xe8   : > { %2037 = vmatprep.subr.bf16.mxu0 %v4386_v40  ;;  %v2579_v0 = vpop.permute.xlu0 %2578 }
  0xe9   : > { %1401 = vmatmul.mubr.bf16.gmra.mrb[4].mxu0 %v4126_v39  ;;  %1473 = vmatmul.mubr.bf16.gmra.mrb[4].mxu1 %v4127_v43  ;;  %v4208_v39 = vld [vmem:[%s5810_s2 + $0x64] ss:$8 sps:$4 sm:$0xff]   ;;  %v4210_v43 = vld [vmem:[%s5811_s3 + $0x180] ss:$8 sps:$4 sm:$0xff]  }
  0xea   : > { %3549 = vmatprep.mubr.msk.bf16.mxu0 %vm1263_vm0, %v4128_v44  ;;  %3558 = vmatprep.mubr.msk.bf16.mxu1 %vm1263_vm0, %v4130_v42  ;;  %v4211_v44 = vld [vmem:[%s5810_s2 + $0x60] ss:$8 sps:$4 sm:$0xff]   ;;  %v4212_v42 = vld [vmem:[%s5811_s3 + $0x194] ss:$8 sps:$4 sm:$0xff]  }
  0xeb   : > { %2038 = vmatpush1.bf16.msra.mxu0 %v4598_v46  ;;  %v4138_v46 = vld [vmem:[%s5811_s3 + $0x30] ss:$8 sps:$4 sm:$0xff]  }
  0xec   : > { %2039 = vmatprep.subr.bf16.mxu0 %v4386_v40  ;;  %v2583_v6 = vpop.permute.xlu0 %2582 }
  0xef   : > { %2040 = vmatpush1.bf16.msra.mxu0 %v4605_v48  ;;  %v4139_v48 = vld [vmem:[%s5811_s3 + $0xc0] ss:$8 sps:$4 sm:$0xff]  }
  0xf0   : > { %2041 = vmatprep.subr.bf16.mxu0 %v4386_v40 }
  0xf1   : > { %1409 = vmatmul.mubr.bf16.gmra.mrb[8].mxu0 %v4132_v45  ;;  %1481 = vmatmul.mubr.bf16.gmra.mrb[8].mxu1 %v4133_v41  ;;  %v4214_v45 = vld [vmem:[%s5810_s2 + $0x74] ss:$8 sps:$4 sm:$0xff]   ;;  %v4216_v41 = vld [vmem:[%s5811_s3 + $0x190] ss:$8 sps:$4 sm:$0xff]  }
  0xf2   : > { %3550 = vmatprep.mubr.msk.bf16.mxu0 %vm1263_vm0, %v4134_v47  ;;  %3559 = vmatprep.mubr.msk.bf16.mxu1 %vm1263_vm0, %v4136_v49  ;;  %v4217_v47 = vld [vmem:[%s5810_s2 + $0x70] ss:$8 sps:$4 sm:$0xff]   ;;  %v4218_v49 = vld [vmem:[%s5811_s3 + $0x1a4] ss:$8 sps:$4 sm:$0xff]  }
  0xf3   : > { %2042 = vmatpush1.bf16.msra.mxu0 %v4612_v50  ;;  %v4144_v50 = vld [vmem:[%s5811_s3 + $0x40] ss:$8 sps:$4 sm:$0xff]  }
  0xf4   : > { %2043 = vmatprep.subr.bf16.mxu0 %v4386_v40 }
  0xf7   : > { %2044 = vmatpush1.bf16.msra.mxu0 %v4619_v52  ;;  %v4145_v52 = vld [vmem:[%s5811_s3 + $0xd0] ss:$8 sps:$4 sm:$0xff]  }
  0xf8   : > { %2045 = vmatprep.subr.bf16.mxu0 %v4386_v40 }
  0xf9   : > { %1417 = vmatmul.mubr.bf16.gmra.mrb[12].mxu0 %v4138_v46  ;;  %1489 = vmatmul.mubr.bf16.gmra.mrb[12].mxu1 %v4139_v48  ;;  %v4220_v46 = vld [vmem:[%s5810_s2 + $0x84] ss:$8 sps:$4 sm:$0xff]   ;;  %v4222_v48 = vld [vmem:[%s5811_s3 + $0x1a0] ss:$8 sps:$4 sm:$0xff]  }
  0xfa   : > { %3551 = vmatprep.mubr.msk.bf16.mxu0 %vm1263_vm0, %v4140_v51  ;;  %3560 = vmatprep.mubr.msk.bf16.mxu1 %vm1263_vm0, %v4142_v53  ;;  %v4223_v51 = vld [vmem:[%s5810_s2 + $0x80] ss:$8 sps:$4 sm:$0xff]   ;;  %v4224_v53 = vld [vmem:[%s5811_s3 + $0x1b4] ss:$8 sps:$4 sm:$0xff]  }
  0xfb   : > { %2046 = vmatpush1.bf16.msra.mxu0 %v4623_v54  ;;  %v2577_v54 = vpop.permute.xlu1 %2576 }
  0xfc   : > { %2047 = vmatprep.subr.bf16.mxu0 %v4386_v40 }
  0xff   : > { %2048 = vmatpush1.bf16.msra.mxu0 %v4630_v56  ;;  %v4151_v56 = vld [vmem:[%s5811_s3 + $0xe0] ss:$8 sps:$4 sm:$0xff]   ;;  %v2581_v63 = vpop.permute.xlu1 %2580 }
 0x100   : > { %2049 = vmatprep.subr.bf16.mxu0 %v4386_v40  ;;  %v2590_v1 = vsel %vm2586_vm2, %v2579_v0, %v2581_v63  ;;  %v4242_v63 = vld [vmem:[%s5811_s3 + $0x1e4] ss:$8 sps:$4 sm:$0xff]  }
 0x101   : > { %1425 = vmatmul.mubr.bf16.gmra.mrb[16].mxu0 %v4144_v50  ;;  %1497 = vmatmul.mubr.bf16.gmra.mrb[16].mxu1 %v4145_v52  ;;  %v4226_v50 = vld [vmem:[%s5810_s2 + $0x94] ss:$8 sps:$4 sm:$0xff]   ;;  %v4228_v52 = vld [vmem:[%s5811_s3 + $0x1b0] ss:$8 sps:$4 sm:$0xff]   ;;  %v4244_v0 = vld [vmem:[%s5810_s2 + $0xc4] ss:$8 sps:$4 sm:$0xff]  }
 0x102   : > { %3552 = vmatprep.mubr.msk.bf16.mxu0 %vm1263_vm0, %v4146_v55  ;;  %3561 = vmatprep.mubr.msk.bf16.mxu1 %vm1263_vm0, %v4148_v57  ;;  %v4229_v55 = vld [vmem:[%s5810_s2 + $0x90] ss:$8 sps:$4 sm:$0xff]   ;;  %v4230_v57 = vld [vmem:[%s5811_s3 + $0x1c4] ss:$8 sps:$4 sm:$0xff]  }
 0x103   : > { %2050 = vmatpush1.bf16.msra.mxu0 %v4640_v58  ;;  %v4154_v58 = vld [vmem:[%s5811_s3 + $0xf4] ss:$8 sps:$4 sm:$0xff]   ;;  %v2585_v5 = vpop.permute.xlu1 %2584 }
 0x104   : > { %2051 = vmatprep.subr.bf16.mxu0 %v4386_v40  ;;  %v2589_v40 = vsel %vm2586_vm2, %v2575_v59, %v2577_v54  ;;  %v2591_v7 = vsel %vm2586_vm2, %v2583_v6, %v2585_v5  ;;  %v4232_v54 = vld [vmem:[%s5810_s2 + $0xa4] ss:$8 sps:$4 sm:$0xff]   ;;  %v4234_v59 = vld [vmem:[%s5811_s3 + $0x1c0] ss:$8 sps:$4 sm:$0xff]   ;;  %v4253_v5 = vld [vmem:[%s5810_s2 + $0xd0] ss:$8 sps:$4 sm:$0xff]  }
 0x105   : > { %3832 = vmatprep.subr.bf16.mxu1 %v2589_v40  ;;  %v4254_v6 = vld [vmem:[%s5810_s2 + $0xe4] ss:$8 sps:$4 sm:$0xff]  }
 0x106   : > { %3833 = vmatpush3.bf16.msra.mxu1 %v2589_v40  ;;  %v4241_v40 = vld [vmem:[%s5810_s2 + $0xb0] ss:$8 sps:$4 sm:$0xff]  }
 0x107   : > { %2052 = vmatpush1.bf16.msra.mxu0 %v4655_v62  ;;  %v4157_v62 = vld [vmem:[%s5811_s3 + $0xf0] ss:$8 sps:$4 sm:$0xff]   ;;  %3834 = vmatprep.subr.bf16.mxu1 %v2590_v1 }
 0x109   : > { %1433 = vmatmul.mubr.bf16.gmra.mrb[20].mxu0 %v4150_v60  ;;  %1505 = vmatmul.mubr.bf16.gmra.mrb[20].mxu1 %v4151_v56  ;;  %v4235_v60 = vld [vmem:[%s5810_s2 + $0xa0] ss:$8 sps:$4 sm:$0xff]   ;;  %v4236_v56 = vld [vmem:[%s5811_s3 + $0x1d4] ss:$8 sps:$4 sm:$0xff]  }
 0x10a   : > { %3553 = vmatprep.mubr.msk.bf16.mxu0 %vm1263_vm0, %v4152_v61  ;;  %3562 = vmatprep.mubr.msk.bf16.mxu1 %vm1263_vm0, %v4154_v58  ;;  %v4238_v61 = vld [vmem:[%s5810_s2 + $0xb4] ss:$8 sps:$4 sm:$0xff]   ;;  %v4240_v58 = vld [vmem:[%s5811_s3 + $0x1d0] ss:$8 sps:$4 sm:$0xff]  }
 0x10b   : > { %3835 = vmatpush3.bf16.msra.mxu1 %v2590_v1  ;;  %v4246_v1 = vld [vmem:[%s5811_s3 + $0x1e0] ss:$8 sps:$4 sm:$0xff]  }
 0x10c   : > { %3836 = vmatprep.subr.bf16.mxu1 %v2591_v7 }
 0x10f   : > { %3837 = vmatpush3.bf16.msra.mxu1 %v2591_v7  ;;  %v4256_v7 = vld [vmem:[%s5812_s4] sm:$0xff]  }
 0x111   : > { %1441 = vmatmul.mubr.bf16.gmra.mrb[24].mxu0 %v4156_v2  ;;  %1513 = vmatmul.mubr.bf16.gmra.mrb[24].mxu1 %v4157_v62  ;;  %v4247_v2 = vld [vmem:[%s5810_s2 + $0xc0] ss:$8 sps:$4 sm:$0xff]   ;;  %v4248_v62 = vld [vmem:[%s5811_s3 + $0x1f4] ss:$8 sps:$4 sm:$0xff]  }
 0x112   : > { %3554 = vmatprep.mubr.msk.bf16.mxu0 %vm1263_vm0, %v4158_v3  ;;  %3563 = vmatprep.mubr.msk.bf16.mxu1 %vm1263_vm0, %v4160_v4  ;;  %v4250_v3 = vld [vmem:[%s5810_s2 + $0xd4] ss:$8 sps:$4 sm:$0xff]   ;;  %v4252_v4 = vld [vmem:[%s5811_s3 + $0x1f0] ss:$8 sps:$4 sm:$0xff]  }
 0x119   : > { %1449 = vmatmul.mubr.bf16.gmra.mrb[28].mxu0 %v4162_v8  ;;  %1521 = vmatmul.mubr.bf16.gmra.mrb[28].mxu1 %v4163_v9  ;;  %v4257_v8 = vld [vmem:[%s5810_s2 + $0xe0] ss:$8 sps:$4 sm:$0xff]  }
 0x11a   : > { %3555 = vmatprep.mubr.msk.bf16.mxu0 %vm1263_vm0, %v4164_v10  ;;  %3564 = vmatprep.mubr.msk.bf16.mxu1 %vm1263_vm0, %v4166_v11  ;;  %v4258_v9 = vld [vmem:[%s5812_s4 + $0x8] sm:$0xff]   ;;  %v4259_v10 = vld [vmem:[%s5810_s2 + $0xf4] ss:$8 sps:$4 sm:$0xff]  }
 0x11b   : > { %v4261_v11 = vld [vmem:[%s5812_s4 + $0x10] sm:$0xff]  }
 0x121   : > { %1457 = vmatmul.mubr.bf16.gmra.mrb[32].mxu0 %v4168_v12  ;;  %1529 = vmatmul.mubr.bf16.gmra.mrb[32].mxu1 %v4169_v13  ;;  %v4262_v12 = vld [vmem:[%s5810_s2 + $0xf0] ss:$8 sps:$4 sm:$0xff]  }
 0x122   : > { %3565 = vmatprep.mubr.msk.bf16.mxu1 %vm1263_vm0, %v4170_v14  ;;  %3643 = vmatprep.mubr.msk.bf16.mxu0 %vm1263_vm0, %v4174_v15  ;;  %v4263_v13 = vld [vmem:[%s5812_s4 + $0x18] sm:$0xff]   ;;  %v4264_v14 = vld [vmem:[%s5810_s2 + $0x104] ss:$8 sps:$4 sm:$0xff]  }
 0x123   : > { %v4266_v15 = vld [vmem:[%s5812_s4 + $0x20] sm:$0xff]  }
 0x129   : > { %1537 = vmatmul.mubr.bf16.gmra.mrb[36].mxu1 %v4175_v17  ;;  %2066 = vmatmul.mubr.bf16.vlgmr.msra.gmra.mrb[0].mxu0 %v4172_v16  ;;  %v4267_v16 = vld [vmem:[%s5810_s2 + $0x100] ss:$8 sps:$4 sm:$0xff]  }
 0x12a   : > { %3566 = vmatprep.mubr.msk.bf16.mxu1 %vm1263_vm0, %v4176_v18  ;;  %3644 = vmatprep.mubr.msk.bf16.mxu0 %vm1263_vm0, %v4178_v19  ;;  %v4268_v17 = vld [vmem:[%s5812_s4 + $0x28] sm:$0xff]   ;;  %v4269_v18 = vld [vmem:[%s5810_s2 + $0x114] ss:$8 sps:$4 sm:$0xff]  }
 0x12b   : > { %v4271_v19 = vld [vmem:[%s5812_s4 + $0x30] sm:$0xff]  }
 0x131   : > { %1545 = vmatmul.mubr.bf16.gmra.mrb[40].mxu1 %v4180_v20  ;;  %2074 = vmatmul.mubr.bf16.gmra.mrb[4].mxu0 %v4181_v21  ;;  %v4272_v20 = vld [vmem:[%s5810_s2 + $0x110] ss:$8 sps:$4 sm:$0xff]  }
 0x132   : > { %3567 = vmatprep.mubr.msk.bf16.mxu1 %vm1263_vm0, %v4182_v22  ;;  %3645 = vmatprep.mubr.msk.bf16.mxu0 %vm1263_vm0, %v4184_v23  ;;  %v4273_v21 = vld [vmem:[%s5812_s4 + $0x38] sm:$0xff]   ;;  %v4274_v22 = vld [vmem:[%s5810_s2 + $0x124] ss:$8 sps:$4 sm:$0xff]  }
 0x133   : > { %v4276_v23 = vld [vmem:[%s5812_s4 + $0x40] sm:$0xff]  }
 0x139   : > { %1553 = vmatmul.mubr.bf16.gmra.mrb[44].mxu1 %v4186_v24  ;;  %2082 = vmatmul.mubr.bf16.gmra.mrb[8].mxu0 %v4187_v25 }
 0x13a   : > { %3568 = vmatprep.mubr.msk.bf16.mxu1 %vm1263_vm0, %v4188_v26  ;;  %3646 = vmatprep.mubr.msk.bf16.mxu0 %vm1263_vm0, %v4190_v27  ;;  %v4277_v26 = vld [vmem:[%s5810_s2 + $0x120] ss:$8 sps:$4 sm:$0xff]  }
 0x13b   : > { %v4278_v27 = vld [vmem:[%s5812_s4 + $0x48] sm:$0xff]  }
 0x141   : > { %1561 = vmatmul.mubr.bf16.gmra.mrb[48].mxu1 %v4192_v28  ;;  %2090 = vmatmul.mubr.bf16.gmra.mrb[12].mxu0 %v4193_v29  ;;  %v4279_v29 = vld [vmem:[%s5810_s2 + $0x134] ss:$8 sps:$4 sm:$0xff]  }
 0x142   : > { %3569 = vmatprep.mubr.msk.bf16.mxu1 %vm1263_vm0, %v4194_v30  ;;  %3647 = vmatprep.mubr.msk.bf16.mxu0 %vm1263_vm0, %v4196_v31  ;;  %v4281_v30 = vld [vmem:[%s5812_s4 + $0x50] sm:$0xff]  }
 0x149   : > { %1569 = vmatmul.mubr.bf16.gmra.mrb[52].mxu1 %v4198_v32  ;;  %2098 = vmatmul.mubr.bf16.gmra.mrb[16].mxu0 %v4199_v33 }
 0x14a   : > { %3570 = vmatprep.mubr.msk.bf16.mxu1 %vm1263_vm0, %v4200_v34  ;;  %3648 = vmatprep.mubr.msk.bf16.mxu0 %vm1263_vm0, %v4202_v35  ;;  %v4282_v34 = vld [vmem:[%s5810_s2 + $0x130] ss:$8 sps:$4 sm:$0xff]  }
 0x14b   : > { %v4283_v35 = vld [vmem:[%s5812_s4 + $0x58] sm:$0xff]  }
 0x151   : > { %1577 = vmatmul.mubr.bf16.gmra.mrb[56].mxu1 %v4204_v36  ;;  %2106 = vmatmul.mubr.bf16.gmra.mrb[20].mxu0 %v4205_v37  ;;  %v4284_v37 = vld [vmem:[%s5810_s2 + $0x144] ss:$8 sps:$4 sm:$0xff]  }
 0x152   : > { %3571 = vmatprep.mubr.msk.bf16.mxu1 %vm1263_vm0, %v4206_v38  ;;  %3649 = vmatprep.mubr.msk.bf16.mxu0 %vm1263_vm0, %v4208_v39  ;;  %v4286_v38 = vld [vmem:[%s5812_s4 + $0x60] sm:$0xff]  }
 0x159   : > { %1585 = vmatmul.mubr.bf16.gmra.mrb[60].mxu1 %v4210_v43  ;;  %2114 = vmatmul.mubr.bf16.gmra.mrb[24].mxu0 %v4211_v44 }
 0x15a   : > { %3572 = vmatprep.mubr.msk.bf16.mxu1 %vm1263_vm0, %v4212_v42  ;;  %3650 = vmatprep.mubr.msk.bf16.mxu0 %vm1263_vm0, %v4214_v45  ;;  %v4287_v42 = vld [vmem:[%s5810_s2 + $0x140] ss:$8 sps:$4 sm:$0xff]  }
 0x15b   : > { %v4288_v45 = vld [vmem:[%s5812_s4 + $0x68] sm:$0xff]  }
 0x161   : > { %1593 = vmatmul.mubr.bf16.gmra.mrb[64].mxu1 %v4216_v41  ;;  %2122 = vmatmul.mubr.bf16.gmra.mrb[28].mxu0 %v4217_v47  ;;  %v4289_v47 = vld [vmem:[%s5810_s2 + $0x154] ss:$8 sps:$4 sm:$0xff]  }
 0x162   : > { %3573 = vmatprep.mubr.msk.bf16.mxu1 %vm1263_vm0, %v4218_v49  ;;  %3651 = vmatprep.mubr.msk.bf16.mxu0 %vm1263_vm0, %v4220_v46  ;;  %v4291_v49 = vld [vmem:[%s5812_s4 + $0x70] sm:$0xff]  }
 0x169   : > { %1601 = vmatmul.mubr.bf16.gmra.mrb[68].mxu1 %v4222_v48  ;;  %2130 = vmatmul.mubr.bf16.gmra.mrb[32].mxu0 %v4223_v51 }
 0x16a   : > { %3574 = vmatprep.mubr.msk.bf16.mxu1 %vm1263_vm0, %v4224_v53  ;;  %3652 = vmatprep.mubr.msk.bf16.mxu0 %vm1263_vm0, %v4226_v50  ;;  %v4292_v53 = vld [vmem:[%s5810_s2 + $0x150] ss:$8 sps:$4 sm:$0xff]  }
 0x16b   : > { %v4293_v50 = vld [vmem:[%s5812_s4 + $0x78] sm:$0xff]  }
 0x171   : > { %1609 = vmatmul.mubr.bf16.gmra.mrb[72].mxu1 %v4228_v52  ;;  %2138 = vmatmul.mubr.bf16.gmra.mrb[36].mxu0 %v4229_v55  ;;  %v4294_v55 = vld [vmem:[%s5810_s2 + $0x164] ss:$8 sps:$4 sm:$0xff]  }
 0x172   : > { %3575 = vmatprep.mubr.msk.bf16.mxu1 %vm1263_vm0, %v4230_v57  ;;  %3653 = vmatprep.mubr.msk.bf16.mxu0 %vm1263_vm0, %v4232_v54  ;;  %v4296_v57 = vld [vmem:[%s5812_s4 + $0x80] sm:$0xff]  }
 0x179   : > { %1617 = vmatmul.mubr.bf16.gmra.mrb[76].mxu1 %v4234_v59  ;;  %2146 = vmatmul.mubr.bf16.gmra.mrb[40].mxu0 %v4235_v60 }
 0x17a   : > { %3576 = vmatprep.mubr.msk.bf16.mxu1 %vm1263_vm0, %v4236_v56  ;;  %3654 = vmatprep.mubr.msk.bf16.mxu0 %vm1263_vm0, %v4238_v61  ;;  %v4297_v56 = vld [vmem:[%s5810_s2 + $0x160] ss:$8 sps:$4 sm:$0xff]  }
 0x17b   : > { %v4298_v61 = vld [vmem:[%s5812_s4 + $0x88] sm:$0xff]  }
 0x181   : > { %1625 = vmatmul.mubr.bf16.gmra.mrb[80].mxu1 %v4240_v58  ;;  %2154 = vmatmul.mubr.bf16.gmra.mrb[44].mxu0 %v4241_v40  ;;  %v4299_v40 = vld [vmem:[%s5810_s2 + $0x174] ss:$8 sps:$4 sm:$0xff]  }
 0x182   : > { %3577 = vmatprep.mubr.msk.bf16.mxu1 %vm1263_vm0, %v4242_v63  ;;  %3655 = vmatprep.mubr.msk.bf16.mxu0 %vm1263_vm0, %v4244_v0  ;;  %v4301_v63 = vld [vmem:[%s5812_s4 + $0x90] sm:$0xff]  }
 0x189   : > { %1633 = vmatmul.mubr.bf16.gmra.mrb[84].mxu1 %v4246_v1  ;;  %2162 = vmatmul.mubr.bf16.gmra.mrb[48].mxu0 %v4247_v2 }
 0x18a   : > { %3578 = vmatprep.mubr.msk.bf16.mxu1 %vm1263_vm0, %v4248_v62  ;;  %3656 = vmatprep.mubr.msk.bf16.mxu0 %vm1263_vm0, %v4250_v3  ;;  %v4302_v62 = vld [vmem:[%s5810_s2 + $0x170] ss:$8 sps:$4 sm:$0xff]  }
 0x18b   : > { %v4303_v3 = vld [vmem:[%s5812_s4 + $0x98] sm:$0xff]  }
 0x191   : > { %1641 = vmatmul.mubr.bf16.gmra.mrb[88].mxu1 %v4252_v4  ;;  %2170 = vmatmul.mubr.bf16.gmra.mrb[52].mxu0 %v4253_v5  ;;  %v4304_v5 = vld [vmem:[%s5810_s2 + $0x184] ss:$8 sps:$4 sm:$0xff]  }
 0x192   : > { %3657 = vmatprep.mubr.msk.bf16.mxu0 %vm1263_vm0, %v4254_v6  ;;  %3838 = vmatprep.mubr.msk.bf16.mxu1 %vm2597_vm3, %v4256_v7  ;;  %v4306_v6 = vld [vmem:[%s5812_s4 + $0xa0] sm:$0xff]  }
 0x199   : > { %2178 = vmatmul.mubr.bf16.gmra.mrb[56].mxu0 %v4257_v8  ;;  %3839 = vmatmul.mubr.msk.bf16.vlgmr.msra.gmra.mrb[92].mxu1 %vm2597_vm3, %v4258_v9 }
 0x19a   : > { %3658 = vmatprep.mubr.msk.bf16.mxu0 %vm1263_vm0, %v4259_v10  ;;  %3842 = vmatprep.mubr.msk.bf16.mxu1 %vm2597_vm3, %v4261_v11  ;;  %v4307_v10 = vld [vmem:[%s5810_s2 + $0x180] ss:$8 sps:$4 sm:$0xff]  }
 0x19b   : > { %v4308_v11 = vld [vmem:[%s5812_s4 + $0xa8] sm:$0xff]  }
 0x1a1   : > { %2186 = vmatmul.mubr.bf16.gmra.mrb[60].mxu0 %v4262_v12  ;;  %3843 = vmatmul.mubr.msk.bf16.gmra.mrb[96].mxu1 %vm2597_vm3, %v4263_v13  ;;  %v4309_v13 = vld [vmem:[%s5810_s2 + $0x194] ss:$8 sps:$4 sm:$0xff]  }
 0x1a2   : > { %3659 = vmatprep.mubr.msk.bf16.mxu0 %vm1263_vm0, %v4264_v14  ;;  %3846 = vmatprep.mubr.msk.bf16.mxu1 %vm2597_vm3, %v4266_v15  ;;  %v4311_v14 = vld [vmem:[%s5812_s4 + $0xb0] sm:$0xff]  }
 0x1a9   : > { %2194 = vmatmul.mubr.bf16.gmra.mrb[64].mxu0 %v4267_v16  ;;  %3847 = vmatmul.mubr.msk.bf16.gmra.mrb[100].mxu1 %vm2597_vm3, %v4268_v17 }
 0x1aa   : > { %3660 = vmatprep.mubr.msk.bf16.mxu0 %vm1263_vm0, %v4269_v18  ;;  %3850 = vmatprep.mubr.msk.bf16.mxu1 %vm2597_vm3, %v4271_v19  ;;  %v4312_v18 = vld [vmem:[%s5810_s2 + $0x190] ss:$8 sps:$4 sm:$0xff]  }
 0x1ab   : > { %v4313_v19 = vld [vmem:[%s5812_s4 + $0xb8] sm:$0xff]  }
 0x1b1   : > { %2202 = vmatmul.mubr.bf16.gmra.mrb[68].mxu0 %v4272_v20  ;;  %3851 = vmatmul.mubr.msk.bf16.gmra.mrb[104].mxu1 %vm2597_vm3, %v4273_v21  ;;  %v4314_v21 = vld [vmem:[%s5810_s2 + $0x1a4] ss:$8 sps:$4 sm:$0xff]  }
 0x1b2   : > { %3661 = vmatprep.mubr.msk.bf16.mxu0 %vm1263_vm0, %v4274_v22  ;;  %3854 = vmatprep.mubr.msk.bf16.mxu1 %vm2597_vm3, %v4276_v23  ;;  %v4316_v22 = vld [vmem:[%s5812_s4 + $0xc0] sm:$0xff]  }
 0x1b4   : > { %v5100_v24 = vpop.f32.mrb[0].mxu1 }
 0x1b5   : > { %v1468_v25 = vpop.f32.mrb[1].mxu1 }
 0x1b6   : > { %v5108_v28 = vpop.f32.mrb[2].mxu1 }
 0x1b7   : > { %v1471_v31 = vpop.f32.mrb[3].mxu1 }
 0x1b8   : > { %v4319_v31 = vld [vmem:[%s5810_s2 + $0x1b4] ss:$8 sps:$4 sm:$0xff]  }
 0x1b9   : > { %2210 = vmatmul.mubr.bf16.gmra.mrb[72].mxu0 %v4277_v26  ;;  %3855 = vmatmul.mubr.msk.bf16.gmra.mrb[108].mxu1 %vm2597_vm3, %v4278_v27  ;;  %v4317_v27 = vld [vmem:[%s5810_s2 + $0x1a0] ss:$8 sps:$4 sm:$0xff]  }
 0x1ba   : > { %3662 = vmatprep.mubr.msk.bf16.mxu0 %vm1263_vm0, %v4279_v29  ;;  %3858 = vmatprep.mubr.msk.bf16.mxu1 %vm2597_vm3, %v4281_v30  ;;  %v4318_v29 = vld [vmem:[%s5812_s4 + $0xc8] sm:$0xff]  }
 0x1bc   : > { %v5119_v32 = vpop.f32.mrb[4].mxu1 }
 0x1bd   : > { %v1476_v33 = vpop.f32.mrb[5].mxu1 }
 0x1be   : > { %v5127_v36 = vpop.f32.mrb[6].mxu1  ;;  %v4321_v33 = vld [vmem:[%s5812_s4 + $0xd0] sm:$0xff]  }
 0x1bf   : > { %v1479_v39 = vpop.f32.mrb[7].mxu1 }
 0x1c1   : > { %2218 = vmatmul.mubr.bf16.gmra.mrb[76].mxu0 %v4282_v34  ;;  %3859 = vmatmul.mubr.msk.bf16.gmra.mrb[112].mxu1 %vm2597_vm3, %v4283_v35 }
 0x1c2   : > { %3663 = vmatprep.mubr.msk.bf16.mxu0 %vm1263_vm0, %v4284_v37  ;;  %3862 = vmatprep.mubr.msk.bf16.mxu1 %vm2597_vm3, %v4286_v38 }
 0x1c4   : > { %v5138_v43 = vpop.f32.mrb[8].mxu1 }
 0x1c5   : > { %v1484_v44 = vpop.f32.mrb[9].mxu1 }
 0x1c6   : > { %v5146_v41 = vpop.f32.mrb[10].mxu1  ;;  %v4322_v44 = vld [vmem:[%s5810_s2 + $0x1b0] ss:$8 sps:$4 sm:$0xff]  }
 0x1c7   : > { %v1487_v46 = vpop.f32.mrb[11].mxu1 }
 0x1c8   : > { %v4327_v46 = vld [vmem:[%s5812_s4 + $0xe0] sm:$0xff]  }
 0x1c9   : > { %2226 = vmatmul.mubr.bf16.gmra.mrb[80].mxu0 %v4287_v42  ;;  %3863 = vmatmul.mubr.msk.bf16.gmra.mrb[116].mxu1 %vm2597_vm3, %v4288_v45  ;;  %v4323_v42 = vld [vmem:[%s5812_s4 + $0xd8] sm:$0xff]  }
 0x1ca   : > { %3664 = vmatprep.mubr.msk.bf16.mxu0 %vm1263_vm0, %v4289_v47  ;;  %3866 = vmatprep.mubr.msk.bf16.mxu1 %vm2597_vm3, %v4291_v49  ;;  %v4324_v49 = vld [vmem:[%s5810_s2 + $0x1c4] ss:$8 sps:$4 sm:$0xff]  }
 0x1cc   : > { %v5157_v48 = vpop.f32.mrb[12].mxu1 }
 0x1cd   : > { %v1492_v51 = vpop.f32.mrb[13].mxu1 }
 0x1ce   : > { %v5165_v52 = vpop.f32.mrb[14].mxu1 }
 0x1cf   : > { %v1495_v54 = vpop.f32.mrb[15].mxu1 }
 0x1d1   : > { %2234 = vmatmul.mubr.bf16.gmra.mrb[84].mxu0 %v4292_v53  ;;  %3867 = vmatmul.mubr.msk.bf16.gmra.mrb[120].mxu1 %vm2597_vm3, %v4293_v50 }
 0x1d2   : > { %3665 = vmatprep.mubr.msk.bf16.mxu0 %vm1263_vm0, %v4294_v55  ;;  %3870 = vmatprep.mubr.msk.bf16.mxu1 %vm2597_vm3, %v4296_v57 }
 0x1d4   : > { %v5176_v59 = vpop.f32.mrb[16].mxu1 }
 0x1d5   : > { %v1500_v60 = vpop.f32.mrb[17].mxu1 }
 0x1d6   : > { %v5184_v58 = vpop.f32.mrb[18].mxu1  ;;  %v4326_v60 = vld [vmem:[%s5810_s2 + $0x1c0] ss:$8 sps:$4 sm:$0xff]  }
 0x1d7   : > { %v1503_v0 = vpop.f32.mrb[19].mxu1 }
 0x1d8   : > { %v4335_v0 = vld [vmem:[%s5812_s4 + $0xf0] sm:$0xff]  }
 0x1d9   : > { %2242 = vmatmul.mubr.bf16.gmra.mrb[88].mxu0 %v4297_v56  ;;  %3871 = vmatmul.mubr.msk.bf16.gmra.mrb[124].mxu1 %vm2597_vm3, %v4298_v61  ;;  %v4328_v56 = vld [vmem:[%s5812_s4 + $0xe8] sm:$0xff]  }
 0x1da   : > { %3666 = vmatprep.mubr.msk.bf16.mxu0 %vm1263_vm0, %v4299_v40  ;;  %3874 = vmatprep.mubr.msk.bf16.mxu1 %vm2597_vm3, %v4301_v63  ;;  %v4329_v63 = vld [vmem:[%s5810_s2 + $0x1d4] ss:$8 sps:$4 sm:$0xff]  }
 0x1dc   : > { %v5195_v1 = vpop.f32.mrb[20].mxu1 }
 0x1dd   : > { %v1508_v2 = vpop.f32.mrb[21].mxu1 }
 0x1de   : > { %v5203_v4 = vpop.f32.mrb[22].mxu1 }
 0x1df   : > { %v1511_v7 = vpop.f32.mrb[23].mxu1 }
 0x1e1   : > { %2250 = vmatmul.mubr.bf16.gmra.mrb[92].mxu0 %v4302_v62  ;;  %3875 = vmatmul.mubr.msk.bf16.gmra.mrb[128].mxu1 %vm2597_vm3, %v4303_v3 }
 0x1e2   : > { %3667 = vmatprep.mubr.msk.bf16.mxu0 %vm1263_vm0, %v4304_v5  ;;  %3878 = vmatprep.mubr.msk.bf16.mxu1 %vm2597_vm3, %v4306_v6 }
 0x1e4   : > { %v5214_v8 = vpop.f32.mrb[24].mxu1 }
 0x1e5   : > { %v1516_v9 = vpop.f32.mrb[25].mxu1 }
 0x1e6   : > { %v5222_v12 = vpop.f32.mrb[26].mxu1  ;;  %v4331_v9 = vld [vmem:[%s5810_s2 + $0x1d0] ss:$8 sps:$4 sm:$0xff]  }
 0x1e7   : > { %v1519_v15 = vpop.f32.mrb[27].mxu1 }
 0x1e9   : > { %2258 = vmatmul.mubr.bf16.gmra.mrb[96].mxu0 %v4307_v10  ;;  %3879 = vmatmul.mubr.msk.bf16.gmra.mrb[132].mxu1 %vm2597_vm3, %v4308_v11  ;;  %v4336_v10 = vld [vmem:[%s5812_s4 + $0xf8] sm:$0xff]  }
 0x1ea   : > { %3668 = vmatprep.mubr.msk.bf16.mxu0 %vm1263_vm0, %v4309_v13  ;;  %3882 = vmatprep.mubr.msk.bf16.mxu1 %vm2597_vm3, %v4311_v14  ;;  %v4332_v14 = vld [vmem:[%s5810_s2 + $0x1e4] ss:$8 sps:$4 sm:$0xff]  }
 0x1ec   : > { %v5233_v16 = vpop.f32.mrb[28].mxu1 }
 0x1ed   : > { %v1524_v17 = vpop.f32.mrb[29].mxu1 }
 0x1ee   : > { %v5241_v20 = vpop.f32.mrb[30].mxu1 }
 0x1ef   : > { %v1527_v23 = vpop.f32.mrb[31].mxu1 }
 0x1f0   : > { %v4334_v23 = vld [vmem:[%s5810_s2 + $0x1e0] ss:$8 sps:$4 sm:$0xff]  }
 0x1f1   : > { %2266 = vmatmul.mubr.bf16.gmra.mrb[100].mxu0 %v4312_v18  ;;  %3883 = vmatmul.mubr.msk.bf16.gmra.mrb[136].mxu1 %vm2597_vm3, %v4313_v19 }
 0x1f2   : > { %3669 = vmatprep.mubr.msk.bf16.mxu0 %vm1263_vm0, %v4314_v21  ;;  %3886 = vmatprep.mubr.msk.bf16.mxu1 %vm2597_vm3, %v4316_v22 }
 0x1f4   : > { %v5252_v25 = vpop.f32.mrb[32].mxu1 }
 0x1f5   : > { %v1532_v26 = vpop.f32.mrb[33].mxu1 }
 0x1f6   : > { %v5260_v30 = vpop.f32.mrb[34].mxu1 }
 0x1f7   : > { %v1535_v34 = vpop.f32.mrb[35].mxu1 }
 0x1f9   : > { %2274 = vmatmul.mubr.bf16.gmra.mrb[104].mxu0 %v4317_v27  ;;  %3887 = vmatmul.mubr.msk.bf16.gmra.mrb[140].mxu1 %vm2597_vm3, %v4318_v29  ;;  %v4337_v29 = vld [vmem:[%s5810_s2 + $0x1f4] ss:$8 sps:$4 sm:$0xff]  }
 0x1fa   : > { %3670 = vmatprep.mubr.msk.bf16.mxu0 %vm1263_vm0, %v4319_v31  ;;  %3890 = vmatprep.mubr.msk.bf16.mxu1 %vm2597_vm3, %v4321_v33 }
 0x1fc   : > { %v5271_v35 = vpop.f32.mrb[36].mxu1  ;;  %v5273_v37 = vpop.f32.mrb[0].mxu0 }
 0x1fd   : > { %v1540_v38 = vpop.f32.mrb[37].mxu1  ;;  %v2069_v39 = vpop.f32.mrb[1].mxu0 }
 0x1fe   : > { %v5281_v45 = vpop.f32.mrb[38].mxu1  ;;  %v5283_v47 = vpop.f32.mrb[2].mxu0 }
 0x1ff   : > { %v1543_v51 = vpop.f32.mrb[39].mxu1  ;;  %v2072_v53 = vpop.f32.mrb[3].mxu0 }
 0x201   : > { %2282 = vmatmul.mubr.bf16.gmra.mrb[108].mxu0 %v4322_v44  ;;  %3891 = vmatmul.mubr.msk.bf16.gmra.mrb[144].mxu1 %vm2597_vm3, %v4323_v42  ;;  %v4339_v42 = vld [vmem:[%s5810_s2 + $0x1f0] ss:$8 sps:$4 sm:$0xff]  }
 0x202   : > { %3671 = vmatprep.mubr.msk.bf16.mxu0 %vm1263_vm0, %v4324_v49  ;;  %3894 = vmatprep.mubr.msk.bf16.mxu1 %vm2597_vm3, %v4327_v46 }
 0x204   : > { %v5294_v50 = vpop.f32.mrb[40].mxu1  ;;  %v5296_v55 = vpop.f32.mrb[4].mxu0 }
 0x205   : > { %v1548_v57 = vpop.f32.mrb[41].mxu1  ;;  %v2077_v54 = vpop.f32.mrb[5].mxu0 }
 0x206   : > { %v5304_v61 = vpop.f32.mrb[42].mxu1  ;;  %v5306_v40 = vpop.f32.mrb[6].mxu0 }
 0x207   : > { %v1551_v2 = vpop.f32.mrb[43].mxu1  ;;  %v2080_v62 = vpop.f32.mrb[7].mxu0 }
 0x209   : > { %2290 = vmatmul.mubr.bf16.gmra.mrb[112].mxu0 %v4326_v60  ;;  %3895 = vmatmul.mubr.msk.bf16.gmra.mrb[148].mxu1 %vm2597_vm3, %v4328_v56 }
 0x20a   : > { %3672 = vmatprep.mubr.msk.bf16.mxu0 %vm1263_vm0, %v4329_v63  ;;  %3898 = vmatprep.mubr.msk.bf16.mxu1 %vm2597_vm3, %v4335_v0 }
 0x20c   : > { %v5317_v3 = vpop.f32.mrb[44].mxu1  ;;  %v5319_v5 = vpop.f32.mrb[8].mxu0 }
 0x20d   : > { %v1556_v6 = vpop.f32.mrb[45].mxu1  ;;  %v2085_v7 = vpop.f32.mrb[9].mxu0 }
 0x20e   : > { %v5327_v11 = vpop.f32.mrb[46].mxu1  ;;  %v5329_v13 = vpop.f32.mrb[10].mxu0 }
 0x20f   : > { %v1559_v15 = vpop.f32.mrb[47].mxu1  ;;  %v2088_v17 = vpop.f32.mrb[11].mxu0 }
 0x211   : > { %2298 = vmatmul.mubr.bf16.gmra.mrb[116].mxu0 %v4331_v9  ;;  %3899 = vmatmul.mubr.msk.bf16.gmra.mrb[152].mxu1 %vm2597_vm3, %v4336_v10 }
 0x212   : > { %3673 = vmatprep.mubr.msk.bf16.mxu0 %vm1263_vm0, %v4332_v14 }
 0x214   : > { %v5336_v18 = vpop.f32.mrb[48].mxu1  ;;  %v5338_v19 = vpop.f32.mrb[12].mxu0 }
 0x215   : > { %v1564_v21 = vpop.f32.mrb[49].mxu1  ;;  %v2093_v22 = vpop.f32.mrb[13].mxu0 }
 0x216   : > { %v5343_v26 = vpop.f32.mrb[50].mxu1  ;;  %v5345_v27 = vpop.f32.mrb[14].mxu0 }
 0x217   : > { %v1567_v31 = vpop.f32.mrb[51].mxu1  ;;  %v2096_v33 = vpop.f32.mrb[15].mxu0 }
 0x219   : > { %2306 = vmatmul.mubr.bf16.gmra.mrb[120].mxu0 %v4334_v23 }
 0x21a   : > { %3674 = vmatprep.mubr.msk.bf16.mxu0 %vm1263_vm0, %v4337_v29 }
 0x21c   : > { %v5351_v34 = vpop.f32.mrb[52].mxu1  ;;  %v5353_v38 = vpop.f32.mrb[16].mxu0 }
 0x21d   : > { %v1572_v39 = vpop.f32.mrb[53].mxu1  ;;  %v2101_v44 = vpop.f32.mrb[17].mxu0 }
 0x21e   : > { %v5358_v49 = vpop.f32.mrb[54].mxu1  ;;  %v5360_v46 = vpop.f32.mrb[18].mxu0 }
 0x21f   : > { %v1575_v51 = vpop.f32.mrb[55].mxu1  ;;  %v2104_v53 = vpop.f32.mrb[19].mxu0 }
 0x221   : > { %2314 = vmatmul.mubr.bf16.gmra.mrb[124].mxu0 %v4339_v42 }
 0x224   : > { %v5362_v57 = vpop.f32.mrb[56].mxu1  ;;  %v5364_v54 = vpop.f32.mrb[20].mxu0 }
 0x225   : > { %v1580_v60 = vpop.f32.mrb[57].mxu1  ;;  %v2109_v56 = vpop.f32.mrb[21].mxu0 }
 0x226   : > { %v5366_v63 = vpop.f32.mrb[58].mxu1  ;;  %v5368_v0 = vpop.f32.mrb[22].mxu0 }
 0x227   : > { %v1583_v2 = vpop.f32.mrb[59].mxu1  ;;  %v2112_v62 = vpop.f32.mrb[23].mxu0 }
 0x22c   : > { %v5370_v6 = vpop.f32.mrb[60].mxu1  ;;  %v5372_v7 = vpop.f32.mrb[24].mxu0 }
 0x22d   : > { %v1588_v9 = vpop.f32.mrb[61].mxu1  ;;  %v2117_v10 = vpop.f32.mrb[25].mxu0 }
 0x22e   : > { %v5374_v14 = vpop.f32.mrb[62].mxu1  ;;  %v5376_v15 = vpop.f32.mrb[26].mxu0 }
 0x22f   : > { %v1591_v17 = vpop.f32.mrb[63].mxu1  ;;  %v2120_v21 = vpop.f32.mrb[27].mxu0 }
 0x234   : > { %v5378_v22 = vpop.f32.mrb[64].mxu1  ;;  %v5380_v23 = vpop.f32.mrb[28].mxu0 }
 0x235   : > { %5817 = vst [vmem:[#allocation5_spill] sm:$0xff] %v5378_v22  ;;  %v1596_v29 = vpop.f32.mrb[65].mxu1  ;;  %v2125_v31 = vpop.f32.mrb[29].mxu0 }
 0x236   : > { %v5382_v33 = vpop.f32.mrb[66].mxu1  ;;  %v5384_v39 = vpop.f32.mrb[30].mxu0 }
 0x237   : > { %5818 = vst [vmem:[#allocation6_spill] sm:$0xff] %v5382_v33  ;;  %v1599_v44 = vpop.f32.mrb[67].mxu1  ;;  %v2128_v42 = vpop.f32.mrb[31].mxu0 }
 0x23c   : > { %v5386_v51 = vpop.f32.mrb[68].mxu1  ;;  %v5388_v53 = vpop.f32.mrb[32].mxu0 }
 0x23d   : > { %5819 = vst [vmem:[#allocation7_spill] sm:$0xff] %v5386_v51  ;;  %v1604_v60 = vpop.f32.mrb[69].mxu1  ;;  %v2133_v56 = vpop.f32.mrb[33].mxu0 }
 0x23e   : > { %v5390_v2 = vpop.f32.mrb[70].mxu1  ;;  %v5392_v62 = vpop.f32.mrb[34].mxu0 }
 0x23f   : > { %5820 = vst [vmem:[#allocation8_spill] sm:$0xff] %v5390_v2  ;;  %v1607_v9 = vpop.f32.mrb[71].mxu1  ;;  %v2136_v10 = vpop.f32.mrb[35].mxu0 }
 0x244   : > { %v5394_v17 = vpop.f32.mrb[72].mxu1  ;;  %v2139_v21 = vpop.f32.mrb[36].mxu0 }
 0x245   : > { %5821 = vst [vmem:[#allocation9_spill] sm:$0xff] %v5394_v17  ;;  %v5397_v29 = vadd.f32 %v2139_v21, %v5100_v24  ;;  %v1612_v31 = vpop.f32.mrb[73].mxu1  ;;  %v2141_v44 = vpop.f32.mrb[37].mxu0 }
 0x246   : > { %v5399_v42 = vpop.f32.mrb[74].mxu1  ;;  %v2142_v51 = vpop.f32.mrb[38].mxu0 }
 0x247   : > { %5822 = vst [vmem:[#allocation10_spill] sm:$0xff] %v5399_v42  ;;  %v5402_v60 = vadd.f32 %v2142_v51, %v5108_v28  ;;  %v1615_v56 = vpop.f32.mrb[75].mxu1  ;;  %v2144_v2 = vpop.f32.mrb[39].mxu0 }
 0x24c   : > { %v5404_v33 = vpop.f32.mrb[76].mxu1  ;;  %v2147_v9 = vpop.f32.mrb[40].mxu0 }
 0x24d   : > { %5823 = vst [vmem:[#allocation11_spill] sm:$0xff] %v5404_v33  ;;  %v5407_v10 = vadd.f32 %v2147_v9, %v5119_v32  ;;  %v1620_v17 = vpop.f32.mrb[77].mxu1  ;;  %v2149_v22 = vpop.f32.mrb[41].mxu0 }
 0x24e   : > { %v5409_v24 = vpop.f32.mrb[78].mxu1  ;;  %v2150_v21 = vpop.f32.mrb[42].mxu0 }
 0x24f   : > { %5824 = vst [vmem:[#allocation12_spill] sm:$0xff] %v5409_v24  ;;  %v5412_v31 = vadd.f32 %v2150_v21, %v5127_v36  ;;  %v1623_v44 = vpop.f32.mrb[79].mxu1  ;;  %v2152_v42 = vpop.f32.mrb[43].mxu0 }
 0x254   : > { %v5414_v28 = vpop.f32.mrb[80].mxu1  ;;  %v2155_v51 = vpop.f32.mrb[44].mxu0 }
 0x255   : > { %5825 = vst [vmem:[#allocation13_spill] sm:$0xff] %v5414_v28  ;;  %v5417_v2 = vadd.f32 %v2155_v51, %v5138_v43  ;;  %v1628_v56 = vpop.f32.mrb[81].mxu1  ;;  %v2157_v33 = vpop.f32.mrb[45].mxu0 }
 0x256   : > { %v5419_v32 = vpop.f32.mrb[82].mxu1  ;;  %v2158_v17 = vpop.f32.mrb[46].mxu0 }
 0x257   : > { %5826 = vst [vmem:[#allocation14_spill] sm:$0xff] %v5419_v32  ;;  %v5422_v22 = vadd.f32 %v2158_v17, %v5146_v41  ;;  %v1631_v9 = vpop.f32.mrb[83].mxu1  ;;  %v2160_v24 = vpop.f32.mrb[47].mxu0 }
 0x25c   : > { %v5424_v36 = vpop.f32.mrb[84].mxu1  ;;  %v2163_v21 = vpop.f32.mrb[48].mxu0 }
 0x25d   : > { %5827 = vst [vmem:[#allocation15_spill] sm:$0xff] %v5424_v36  ;;  %v5427_v42 = vadd.f32 %v2163_v21, %v5157_v48  ;;  %v1636_v44 = vpop.f32.mrb[85].mxu1  ;;  %v2165_v28 = vpop.f32.mrb[49].mxu0 }
 0x25e   : > { %v5429_v43 = vpop.f32.mrb[86].mxu1  ;;  %v2166_v51 = vpop.f32.mrb[50].mxu0 }
 0x25f   : > { %5828 = vst [vmem:[#allocation16_spill] sm:$0xff] %v5429_v43  ;;  %v5432_v33 = vadd.f32 %v2166_v51, %v5165_v52  ;;  %v1639_v56 = vpop.f32.mrb[87].mxu1  ;;  %v2168_v32 = vpop.f32.mrb[51].mxu0 }
 0x264   : > { %v5434_v41 = vpop.f32.mrb[88].mxu1  ;;  %v2171_v17 = vpop.f32.mrb[52].mxu0 }
 0x265   : > { %v5437_v24 = vadd.f32 %v2171_v17, %v5176_v59  ;;  %v1644_v9 = vpop.f32.mrb[89].mxu1  ;;  %v2173_v36 = vpop.f32.mrb[53].mxu0 }
 0x266   : > { %v5439_v48 = vpop.f32.mrb[90].mxu1  ;;  %v2174_v21 = vpop.f32.mrb[54].mxu0 }
 0x267   : > { %5829 = vst [vmem:[#allocation17_spill] sm:$0xff] %v5439_v48  ;;  %v5442_v28 = vadd.f32 %v2174_v21, %v5184_v58  ;;  %v1647_v44 = vpop.f32.mrb[91].mxu1  ;;  %v2176_v43 = vpop.f32.mrb[55].mxu0 }
 0x26c   : > { %v2179_v52 = vpop.f32.mrb[56].mxu0  ;;  %v3840_v51 = vpop.f32.mrb[92].mxu1 }
 0x26d   : > { %v5445_v32 = vadd.f32 %v2179_v52, %v5195_v1  ;;  %v5448_v56 = vadd.f32 %v3840_v51, %v5296_v55  ;;  %v2181_v59 = vpop.f32.mrb[57].mxu0  ;;  %v2728_v17 = vpop.f32.mrb[93].mxu1 }
 0x26e   : > { %v5451_v36 = vadd.f32 %v2728_v17, %v5273_v37  ;;  %v2182_v9 = vpop.f32.mrb[58].mxu0  ;;  %v3841_v48 = vpop.f32.mrb[94].mxu1 }
 0x26f   : > { %v5454_v58 = vadd.f32 %v2182_v9, %v5203_v4  ;;  %v5457_v43 = vadd.f32 %v3841_v48, %v5306_v40  ;;  %v2731_v21 = vpop.f32.mrb[95].mxu1  ;;  %v2184_v44 = vpop.f32.mrb[59].mxu0 }
 0x270   : > { %v5460_v1 = vadd.f32 %v2731_v21, %v5283_v47 }
 0x274   : > { %v2187_v55 = vpop.f32.mrb[60].mxu0  ;;  %v3844_v52 = vpop.f32.mrb[96].mxu1 }
 0x275   : > { %v5463_v51 = vadd.f32 %v2187_v55, %v5214_v8  ;;  %v5466_v37 = vadd.f32 %v3844_v52, %v5338_v19  ;;  %v2189_v59 = vpop.f32.mrb[61].mxu0  ;;  %v2744_v17 = vpop.f32.mrb[97].mxu1 }
 0x276   : > { %v5469_v4 = vadd.f32 %v2744_v17, %v5319_v5  ;;  %v2190_v40 = vpop.f32.mrb[62].mxu0  ;;  %v3845_v48 = vpop.f32.mrb[98].mxu1 }
 0x277   : > { %v5472_v9 = vadd.f32 %v2190_v40, %v5222_v12  ;;  %v5475_v47 = vadd.f32 %v3845_v48, %v5345_v27  ;;  %v2747_v21 = vpop.f32.mrb[99].mxu1  ;;  %v2192_v44 = vpop.f32.mrb[63].mxu0 }
 0x278   : > { %v5478_v8 = vadd.f32 %v2747_v21, %v5329_v13 }
 0x27c   : > { %v2195_v19 = vpop.f32.mrb[64].mxu0  ;;  %v3848_v55 = vpop.f32.mrb[100].mxu1 }
 0x27d   : > { %v5481_v52 = vadd.f32 %v2195_v19, %v5233_v16  ;;  %v5484_v5 = vadd.f32 %v3848_v55, %v5364_v54  ;;  %v2197_v59 = vpop.f32.mrb[65].mxu0  ;;  %v2760_v17 = vpop.f32.mrb[101].mxu1  ;;  %v3144_v54 = vld [vmem:[%s5813_s5 + $0x8] sm:$0xff] }
 0x27e   : > { %v5487_v12 = vadd.f32 %v2760_v17, %v5353_v38  ;;  %v2198_v27 = vpop.f32.mrb[66].mxu0  ;;  %v3849_v40 = vpop.f32.mrb[102].mxu1  ;;  %3213 = vmatprep.mubr.f32.mxu1 %v3144_v54 }
 0x27f   : > { %v5490_v48 = vadd.f32 %v2198_v27, %v5241_v20  ;;  %v5493_v13 = vadd.f32 %v3849_v40, %v5368_v0  ;;  %v2763_v21 = vpop.f32.mrb[103].mxu1  ;;  %v2200_v44 = vpop.f32.mrb[67].mxu0 }
 0x280   : > { %v5496_v16 = vadd.f32 %v2763_v21, %v5360_v46 }
 0x284   : > { %v2203_v38 = vpop.f32.mrb[68].mxu0  ;;  %v3852_v19 = vpop.f32.mrb[104].mxu1 }
 0x285   : > { %v5502_v55 = vadd.f32 %v2203_v38, %v5252_v25  ;;  %v5505_v20 = vadd.f32 %v3852_v19, %v5380_v23  ;;  %v2205_v0 = vpop.f32.mrb[69].mxu0  ;;  %v2776_v59 = vpop.f32.mrb[105].mxu1 }
 0x286   : > { %v5508_v17 = vadd.f32 %v2776_v59, %v5372_v7  ;;  %v2206_v46 = vpop.f32.mrb[70].mxu0  ;;  %v3853_v27 = vpop.f32.mrb[106].mxu1 }
 0x287   : > { %v5511_v40 = vadd.f32 %v2206_v46, %v5260_v30  ;;  %v5514_v21 = vadd.f32 %v3853_v27, %v5384_v39  ;;  %v2779_v44 = vpop.f32.mrb[107].mxu1  ;;  %v2208_v54 = vpop.f32.mrb[71].mxu0 }
 0x288   : > { %v5517_v25 = vadd.f32 %v2779_v44, %v5376_v15 }
 0x28c   : > { %v2211_v23 = vpop.f32.mrb[72].mxu0  ;;  %v3856_v38 = vpop.f32.mrb[108].mxu1 }
 0x28d   : > { %v5520_v19 = vadd.f32 %v2211_v23, %v5271_v35  ;;  %v5523_v7 = vadd.f32 %v3856_v38, %v5397_v29  ;;  %v2213_v0 = vpop.f32.mrb[73].mxu0  ;;  %v2792_v59 = vpop.f32.mrb[109].mxu1 }
 0x28e   : > { %v5526_v30 = vadd.f32 %v2792_v59, %v5388_v53  ;;  %v2214_v39 = vpop.f32.mrb[74].mxu0  ;;  %v3857_v46 = vpop.f32.mrb[110].mxu1 }
 0x28f   : > { %v5529_v27 = vadd.f32 %v2214_v39, %v5281_v45  ;;  %v5532_v15 = vadd.f32 %v3857_v46, %v5402_v60  ;;  %v2795_v44 = vpop.f32.mrb[111].mxu1  ;;  %v2216_v54 = vpop.f32.mrb[75].mxu0 }
 0x290   : > { %v5535_v35 = vadd.f32 %v2795_v44, %v5392_v62 }
 0x294   : > { %v2219_v29 = vpop.f32.mrb[76].mxu0  ;;  %v3860_v23 = vpop.f32.mrb[112].mxu1 }
 0x295   : > { %v5538_v38 = vadd.f32 %v2219_v29, %v5294_v50  ;;  %v5541_v53 = vadd.f32 %v3860_v23, %v5417_v2  ;;  %v2221_v0 = vpop.f32.mrb[77].mxu0  ;;  %v2808_v59 = vpop.f32.mrb[113].mxu1 }
 0x296   : > { %v5544_v45 = vadd.f32 %v2808_v59, %v5407_v10  ;;  %v2222_v60 = vpop.f32.mrb[78].mxu0  ;;  %v3861_v39 = vpop.f32.mrb[114].mxu1 }
 0x297   : > { %v5547_v46 = vadd.f32 %v2222_v60, %v5304_v61  ;;  %v5550_v62 = vadd.f32 %v3861_v39, %v5422_v22  ;;  %v2811_v44 = vpop.f32.mrb[115].mxu1  ;;  %v2224_v54 = vpop.f32.mrb[79].mxu0 }
 0x298   : > { %v5553_v50 = vadd.f32 %v2811_v44, %v5412_v31 }
 0x29c   : > { %v2227_v2 = vpop.f32.mrb[80].mxu0  ;;  %v3864_v29 = vpop.f32.mrb[116].mxu1 }
 0x29d   : > { %v5556_v23 = vadd.f32 %v2227_v2, %v5317_v3  ;;  %v5559_v10 = vadd.f32 %v3864_v29, %v5437_v24  ;;  %v2229_v0 = vpop.f32.mrb[81].mxu0  ;;  %v2824_v59 = vpop.f32.mrb[117].mxu1 }
 0x29e   : > { %v5562_v61 = vadd.f32 %v2824_v59, %v5427_v42  ;;  %v2230_v22 = vpop.f32.mrb[82].mxu0  ;;  %v3865_v60 = vpop.f32.mrb[118].mxu1 }
 0x29f   : > { %v5565_v39 = vadd.f32 %v2230_v22, %v5327_v11  ;;  %v5568_v31 = vadd.f32 %v3865_v60, %v5442_v28  ;;  %v2827_v44 = vpop.f32.mrb[119].mxu1  ;;  %v2232_v54 = vpop.f32.mrb[83].mxu0 }
 0x2a0   : > { %v5571_v3 = vadd.f32 %v2827_v44, %v5432_v33 }
 0x2a4   : > { %v2235_v24 = vpop.f32.mrb[84].mxu0  ;;  %v3868_v2 = vpop.f32.mrb[120].mxu1 }
 0x2a5   : > { %v5574_v29 = vadd.f32 %v2235_v24, %v5336_v18  ;;  %v5577_v42 = vadd.f32 %v3868_v2, %v5463_v51  ;;  %v2237_v0 = vpop.f32.mrb[85].mxu0  ;;  %v2840_v59 = vpop.f32.mrb[121].mxu1 }
 0x2a6   : > { %v5580_v11 = vadd.f32 %v2840_v59, %v5445_v32  ;;  %v2238_v28 = vpop.f32.mrb[86].mxu0  ;;  %v3869_v22 = vpop.f32.mrb[122].mxu1 }
 0x2a7   : > { %5830 = vst [vmem:[#allocation18_spill] sm:$0xff] %v5577_v42  ;;  %v5583_v60 = vadd.f32 %v2238_v28, %v5343_v26  ;;  %v5586_v33 = vadd.f32 %v3869_v22, %v5472_v9  ;;  %v2843_v44 = vpop.f32.mrb[123].mxu1  ;;  %v2240_v54 = vpop.f32.mrb[87].mxu0  ;;  %v3049_v9 = vmul.f32 %v5448_v56, %v5448_v56 }
 0x2a8   : > { %v5589_v18 = vadd.f32 %v2843_v44, %v5454_v58 }
 0x2ac   : > { %v2243_v51 = vpop.f32.mrb[88].mxu0  ;;  %v3872_v24 = vpop.f32.mrb[124].mxu1 }
 0x2ad   : > { %v5592_v2 = vadd.f32 %v2243_v51, %v5351_v34  ;;  %v3017_v32 = vadd.f32 %v3872_v24, %v5502_v55  ;;  %v2245_v0 = vpop.f32.mrb[89].mxu0  ;;  %v2856_v59 = vpop.f32.mrb[125].mxu1  ;;  %v3047_v55 = vmul.f32 %v5451_v36, %v5451_v36 }
 0x2ae   : > { %v3015_v26 = vadd.f32 %v2856_v59, %v5481_v52  ;;  %v2246_v28 = vpop.f32.mrb[90].mxu0  ;;  %v3873_v42 = vpop.f32.mrb[126].mxu1  ;;  %v3050_v52 = vmul.f32 %v5457_v43, %v5457_v43 }
 0x2af   : > { %v3081_v22 = vmul.f32 %v3017_v32, %v3017_v32  ;;  %v5599_v58 = vadd.f32 %v2246_v28, %v5358_v49  ;;  %v3018_v44 = vadd.f32 %v3873_v42, %v5511_v40  ;;  %v2859_v54 = vpop.f32.mrb[127].mxu1  ;;  %v2248_v34 = vpop.f32.mrb[91].mxu0  ;;  %v3048_v49 = vmul.f32 %v5460_v1, %v5460_v1 }
 0x2b0   : > { %v3079_v51 = vmul.f32 %v3015_v26, %v3015_v26  ;;  %v3016_v24 = vadd.f32 %v2859_v54, %v5490_v48 }
 0x2b1   : > { %v5607_v0 = vadd.f32 %v3081_v22, %v3049_v9  ;;  %v3082_v56 = vmul.f32 %v3018_v44, %v3018_v44 }
 0x2b2   : > { %v5611_v32 = vadd.f32 %v3079_v51, %v3047_v55  ;;  %v3080_v40 = vmul.f32 %v3016_v24, %v3016_v24  ;;  %v3053_v55 = vmul.f32 %v5466_v37, %v5466_v37  ;;  %v3052_v37 = vmul.f32 %v5478_v8, %v5478_v8 }
 0x2b3   : > { %v5613_v42 = vadd.f32 %v3082_v56, %v3050_v52 }
 0x2b4   : > { %v5615_v59 = vadd.f32 %v3080_v40, %v3048_v49  ;;  %v2251_v36 = vpop.f32.mrb[92].mxu0  ;;  %v3876_v26 = vpop.f32.mrb[128].mxu1 }
 0x2b5   : > { %v3917_v48 = vpack.c.bf16 %v5613_v42, %v5607_v0  ;;  %v2252_v43 = vadd.f32 %v2251_v36, %v5362_v57  ;;  %v3021_v28 = vadd.f32 %v3876_v26, %v5538_v38  ;;  %v2253_v9 = vpop.f32.mrb[93].mxu0  ;;  %v2872_v22 = vpop.f32.mrb[129].mxu1  ;;  %v3051_v38 = vmul.f32 %v5469_v4, %v5469_v4 }
 0x2b6   : > { %v3913_v1 = vpack.c.bf16 %v5615_v59, %v5611_v32  ;;  %v3019_v44 = vadd.f32 %v2872_v22, %v5520_v19  ;;  %v2254_v54 = vpop.f32.mrb[94].mxu0  ;;  %v3877_v34 = vpop.f32.mrb[130].mxu1  ;;  %v3054_v19 = vmul.f32 %v5475_v47, %v5475_v47  ;;  %v3072_v0 = vmul.f32 %v5571_v3, %v5571_v3 }
 0x2b7   : > { %v3085_v51 = vmul.f32 %v3021_v28, %v3021_v28  ;;  %v2255_v24 = vadd.f32 %v2254_v54, %v5366_v63  ;;  %v3022_v52 = vadd.f32 %v3877_v34, %v5547_v46  ;;  %v2875_v57 = vpop.f32.mrb[131].mxu1  ;;  %v2256_v56 = vpop.f32.mrb[95].mxu0 }
 0x2b8   : > { %v3083_v49 = vmul.f32 %v3019_v44, %v3019_v44  ;;  %v3020_v40 = vadd.f32 %v2875_v57, %v5529_v27  ;;  %v3057_v57 = vmul.f32 %v5484_v5, %v5484_v5  ;;  %v3056_v5 = vmul.f32 %v5496_v16, %v5496_v16 }
 0x2b9   : > { %v5633_v36 = vadd.f32 %v3085_v51, %v3053_v55  ;;  %v3086_v26 = vmul.f32 %v3022_v52, %v3022_v52 }
 0x2ba   : > { %v5637_v63 = vadd.f32 %v3083_v49, %v3051_v38  ;;  %v3084_v46 = vmul.f32 %v3020_v40, %v3020_v40 }
 0x2bb   : > { %v5639_v28 = vadd.f32 %v3086_v26, %v3054_v19 }
 0x2bc   : > { %v5641_v9 = vadd.f32 %v3084_v46, %v3052_v37  ;;  %v2259_v4 = vpop.f32.mrb[96].mxu0  ;;  %v3880_v22 = vpop.f32.mrb[132].mxu1 }
 0x2bd   : > { %v3925_v27 = vpack.c.bf16 %v5639_v28, %v5633_v36  ;;  %v2260_v47 = vadd.f32 %v2259_v4, %v5370_v6  ;;  %v3025_v44 = vadd.f32 %v3880_v22, %v5574_v29  ;;  %v2261_v54 = vpop.f32.mrb[97].mxu0  ;;  %v2888_v34 = vpop.f32.mrb[133].mxu1  ;;  %v3055_v29 = vmul.f32 %v5487_v12, %v5487_v12 }
 0x2be   : > { %v3921_v8 = vpack.c.bf16 %v5641_v9, %v5637_v63  ;;  %v3023_v55 = vadd.f32 %v2888_v34, %v5556_v23  ;;  %v2262_v51 = vpop.f32.mrb[98].mxu0  ;;  %v3881_v52 = vpop.f32.mrb[134].mxu1  ;;  %v3058_v23 = vmul.f32 %v5493_v13, %v5493_v13  ;;  %v5831_v54 = vld [vmem:[#allocation5_spill] sm:$0xff]  ;;  %v3074_v36 = vmul.f32 %v5568_v31, %v5568_v31 }
 0x2bf   : > { %v3089_v56 = vmul.f32 %v3025_v44, %v3025_v44  ;;  %v2263_v38 = vadd.f32 %v2262_v51, %v5374_v14  ;;  %v3026_v49 = vadd.f32 %v3881_v52, %v5583_v60  ;;  %v2891_v6 = vpop.f32.mrb[135].mxu1  ;;  %v2264_v40 = vpop.f32.mrb[99].mxu0  ;;  %v3076_v31 = vmul.f32 %v5589_v18, %v5589_v18 }
 0x2c0   : > { %v3087_v19 = vmul.f32 %v3023_v55, %v3023_v55  ;;  %v3024_v26 = vadd.f32 %v2891_v6, %v5565_v39  ;;  %v5832_v40 = vld [vmem:[#allocation6_spill] sm:$0xff] }
 0x2c1   : > { %v5659_v37 = vadd.f32 %v3089_v56, %v3057_v57  ;;  %v3090_v46 = vmul.f32 %v3026_v49, %v3026_v49  ;;  %v3061_v49 = vmul.f32 %v5505_v20, %v5505_v20  ;;  %v3060_v20 = vmul.f32 %v5517_v25, %v5517_v25 }
 0x2c2   : > { %v5663_v14 = vadd.f32 %v3087_v19, %v3055_v29  ;;  %v3088_v60 = vmul.f32 %v3024_v26, %v3024_v26 }
 0x2c3   : > { %v5665_v4 = vadd.f32 %v3090_v46, %v3058_v23 }
 0x2c4   : > { %v5667_v22 = vadd.f32 %v3088_v60, %v3056_v5  ;;  %v2267_v12 = vpop.f32.mrb[100].mxu0  ;;  %v3884_v44 = vpop.f32.mrb[136].mxu1 }
 0x2c5   : > { %v3933_v39 = vpack.c.bf16 %v5665_v4, %v5659_v37  ;;  %v2268_v13 = vadd.f32 %v2267_v12, %v5831_v54  ;;  %v3029_v34 = vadd.f32 %v3884_v44, %v2252_v43  ;;  %v2269_v55 = vpop.f32.mrb[101].mxu0  ;;  %v2904_v51 = vpop.f32.mrb[137].mxu1  ;;  %v3059_v43 = vmul.f32 %v5508_v17, %v5508_v17 }
 0x2c6   : > { %v3929_v16 = vpack.c.bf16 %v5667_v22, %v5663_v14  ;;  %v3027_v52 = vadd.f32 %v2904_v51, %v5592_v2  ;;  %v2270_v57 = vpop.f32.mrb[102].mxu0  ;;  %v3885_v56 = vpop.f32.mrb[138].mxu1  ;;  %v3062_v2 = vmul.f32 %v5514_v21, %v5514_v21  ;;  %v5833_v51 = vld [vmem:[#allocation7_spill] sm:$0xff]  ;;  %v3075_v14 = vmul.f32 %v5580_v11, %v5580_v11  ;;  %v5843_v11 = vld [vmem:[#allocation17_spill] sm:$0xff] }
 0x2c7   : > { %v3093_v6 = vmul.f32 %v3029_v34, %v3029_v34  ;;  %v2271_v29 = vadd.f32 %v2270_v57, %v5832_v40  ;;  %v3030_v19 = vadd.f32 %v3885_v56, %v2255_v24  ;;  %v2907_v26 = vpop.f32.mrb[139].mxu1  ;;  %v2272_v23 = vpop.f32.mrb[103].mxu0 }
 0x2c8   : > { %v3091_v46 = vmul.f32 %v3027_v52, %v3027_v52  ;;  %v3028_v5 = vadd.f32 %v2907_v26, %v5599_v58  ;;  %v5834_v23 = vld [vmem:[#allocation8_spill] sm:$0xff] }
 0x2c9   : > { %v5683_v60 = vadd.f32 %v3093_v6, %v3061_v49  ;;  %v3094_v12 = vmul.f32 %v3030_v19, %v3030_v19  ;;  %v3065_v19 = vmul.f32 %v5523_v7, %v5523_v7 }
 0x2ca   : > { %v5687_v44 = vadd.f32 %v3091_v46, %v3059_v43  ;;  %v3092_v24 = vmul.f32 %v3028_v5, %v3028_v5 }
 0x2cb   : > { %v5689_v54 = vadd.f32 %v3094_v12, %v3062_v2 }
 0x2cc   : > { %v5691_v34 = vadd.f32 %v3092_v24, %v3060_v20  ;;  %v2275_v17 = vpop.f32.mrb[104].mxu0  ;;  %v3888_v55 = vpop.f32.mrb[140].mxu1  ;;  %v3066_v24 = vmul.f32 %v5532_v15, %v5532_v15 }
 0x2cd   : > { %v2276_v21 = vadd.f32 %v2275_v17, %v5833_v51  ;;  %v3033_v52 = vadd.f32 %v3888_v55, %v2268_v13  ;;  %v2277_v57 = vpop.f32.mrb[105].mxu0  ;;  %v2920_v56 = vpop.f32.mrb[141].mxu1  ;;  %v3063_v13 = vmul.f32 %v5526_v30, %v5526_v30  ;;  %v3064_v55 = vmul.f32 %v5535_v35, %v5535_v35 }
 0x2ce   : > { %v3937_v25 = vpack.c.bf16 %v5691_v34, %v5687_v44  ;;  %v3031_v49 = vadd.f32 %v2920_v56, %v2260_v47  ;;  %v2278_v6 = vpop.f32.mrb[106].mxu0  ;;  %v3889_v40 = vpop.f32.mrb[142].mxu1  ;;  %v3146_v44 = vld [vmem:[%s5813_s5 + $0x18] sm:$0xff]  ;;  %v3148_v34 = vld [vmem:[%s5813_s5 + $0x28] sm:$0x7f] }
 0x2cf   : > { %v3097_v26 = vmul.f32 %v3033_v52, %v3033_v52  ;;  %v2279_v43 = vadd.f32 %v2278_v6, %v5834_v23  ;;  %v3034_v46 = vadd.f32 %v3889_v40, %v2271_v29  ;;  %v2923_v5 = vpop.f32.mrb[143].mxu1  ;;  %v2280_v2 = vpop.f32.mrb[107].mxu0  ;;  %v5835_v6 = vld [vmem:[#allocation9_spill] sm:$0xff] }
 0x2d0   : > { %v3095_v12 = vmul.f32 %v3031_v49, %v3031_v49  ;;  %v3032_v20 = vadd.f32 %v2923_v5, %v2263_v38 }
 0x2d1   : > { %v3129_v47 = vadd.f32 %v3097_v26, %v3065_v19  ;;  %v3098_v17 = vmul.f32 %v3034_v46, %v3034_v46  ;;  %v5836_v26 = vld [vmem:[#allocation10_spill] sm:$0xff] }
 0x2d2   : > { %v3127_v7 = vadd.f32 %v3095_v12, %v3063_v13  ;;  %v3096_v51 = vmul.f32 %v3032_v20, %v3032_v20  ;;  %v3067_v13 = vmul.f32 %v5544_v45, %v5544_v45  ;;  %v3070_v45 = vmul.f32 %v5550_v62, %v5550_v62 }
 0x2d3   : > { %v3130_v52 = vadd.f32 %v3098_v17, %v3066_v24  ;;  %v3069_v24 = vmul.f32 %v5541_v53, %v5541_v53 }
 0x2d4   : > { %v3128_v57 = vadd.f32 %v3096_v51, %v3064_v55  ;;  %v2283_v29 = vpop.f32.mrb[108].mxu0  ;;  %v3892_v56 = vpop.f32.mrb[144].mxu1 }
 0x2d5   : > { %v2284_v40 = vadd.f32 %v2283_v29, %v5835_v6  ;;  %v2285_v23 = vpop.f32.mrb[109].mxu0  ;;  %v2936_v30 = vpop.f32.mrb[145].mxu1  ;;  %v3915_v49 = vpack.c.bf16 %v3130_v52, %v3129_v47  ;;  %v5837_v29 = vld [vmem:[#allocation11_spill] sm:$0xff] }
 0x2d6   : > { %v3035_v38 = vadd.f32 %v2936_v30, %v2276_v21  ;;  %v2286_v5 = vpop.f32.mrb[110].mxu0  ;;  %v3893_v2 = vpop.f32.mrb[146].mxu1  ;;  %v3911_v15 = vpack.c.bf16 %v3128_v57, %v3127_v7  ;;  %v3068_v21 = vmul.f32 %v5553_v50, %v5553_v50 }
 0x2d7   : > { %v3037_v19 = vadd.f32 %v3892_v56, %v2284_v40  ;;  %v2287_v46 = vadd.f32 %v2286_v5, %v5836_v26  ;;  %v2939_v58 = vpop.f32.mrb[147].mxu1  ;;  %v2288_v35 = vpop.f32.mrb[111].mxu0  ;;  %v5838_v40 = vld [vmem:[#allocation12_spill] sm:$0xff]  ;;  %v3071_v5 = vmul.f32 %v5562_v61, %v5562_v61 }
 0x2d8   : > { %v3099_v12 = vmul.f32 %v3035_v38, %v3035_v38  ;;  %v3036_v20 = vadd.f32 %v2939_v58, %v2279_v43  ;;  %3912 = vmatprep.subr.bf16.mxu1 %v3911_v15  ;;  %v5839_v35 = vld [vmem:[#allocation13_spill] sm:$0xff] }
 0x2d9   : > { %v3101_v17 = vmul.f32 %v3037_v19, %v3037_v19  ;;  %v3038_v47 = vadd.f32 %v3893_v2, %v2287_v46  ;;  %3914 = vmatpush3.bf16.msra.mxu1 %v3913_v1 }
 0x2da   : > { %v3131_v55 = vadd.f32 %v3099_v12, %v3067_v13  ;;  %v3100_v7 = vmul.f32 %v3036_v20, %v3036_v20  ;;  %3916 = vmatprep.subr.bf16.mxu1 %v3915_v49 }
 0x2db   : > { %v3133_v58 = vadd.f32 %v3101_v17, %v3069_v24  ;;  %v3102_v43 = vmul.f32 %v3038_v47, %v3038_v47 }
 0x2dc   : > { %v3132_v51 = vadd.f32 %v3100_v7, %v3068_v21  ;;  %v2291_v52 = vpop.f32.mrb[112].mxu0  ;;  %v3896_v53 = vpop.f32.mrb[148].mxu1  ;;  %v3073_v21 = vmul.f32 %v5559_v10, %v5559_v10 }
 0x2dd   : > { %v3134_v57 = vadd.f32 %v3102_v43, %v3070_v45  ;;  %v2292_v56 = vadd.f32 %v2291_v52, %v5837_v29  ;;  %v2293_v6 = vpop.f32.mrb[113].mxu0  ;;  %3918 = vmatpush3.bf16.msra.mxu1 %v3917_v48  ;;  %v2952_v50 = vpop.f32.mrb[149].mxu1  ;;  %v5841_v43 = vld [vmem:[#allocation15_spill] sm:$0xff] }
 0x2de   : > { %v2294_v32 = vpop.f32.mrb[114].mxu0  ;;  %v3897_v59 = vpop.f32.mrb[150].mxu1  ;;  %v3919_v1 = vpack.c.bf16 %v3132_v51, %v3131_v55 }
 0x2df   : > { %v2295_v23 = vadd.f32 %v2294_v32, %v5838_v40  ;;  %v3039_v62 = vadd.f32 %v2952_v50, %v2292_v56  ;;  %v2955_v30 = vpop.f32.mrb[151].mxu1  ;;  %v3923_v49 = vpack.c.bf16 %v3134_v57, %v3133_v58  ;;  %v2296_v38 = vpop.f32.mrb[115].mxu0  ;;  %v5842_v57 = vld [vmem:[#allocation16_spill] sm:$0xff] }
 0x2e0   : > { %3920 = vmatprep.subr.bf16.mxu1 %v3919_v1 }
 0x2e1   : > { %v3103_v2 = vmul.f32 %v3039_v62, %v3039_v62  ;;  %v3040_v15 = vadd.f32 %v2955_v30, %v2295_v23  ;;  %3922 = vmatpush3.bf16.msra.mxu1 %v3921_v8  ;;  %v5840_v8 = vld [vmem:[#allocation14_spill] sm:$0xff] }
 0x2e2   : > { %3924 = vmatprep.subr.bf16.mxu1 %v3923_v49 }
 0x2e3   : > { %v3135_v42 = vadd.f32 %v3103_v2, %v3071_v5  ;;  %v3104_v48 = vmul.f32 %v3040_v15, %v3040_v15  ;;  %v5844_v2 = vld [vmem:[#allocation18_spill] sm:$0xff] }
 0x2e4   : > { %v2299_v19 = vpop.f32.mrb[116].mxu0  ;;  %v3900_v26 = vpop.f32.mrb[152].mxu1  ;;  %v3077_v37 = vmul.f32 %v5844_v2, %v5844_v2 }
 0x2e5   : > { %v3136_v46 = vadd.f32 %v3104_v48, %v3072_v0  ;;  %v2300_v13 = vadd.f32 %v2299_v19, %v5839_v35  ;;  %v2301_v12 = vpop.f32.mrb[117].mxu0  ;;  %3926 = vmatpush3.bf16.msra.mxu1 %v3925_v27  ;;  %v2968_v61 = vpop.f32.mrb[153].mxu1  ;;  %v5845_v48 = vpack.c.bf16 %v5689_v54, %v5683_v60  ;;  %v3143_v19 = vld [vmem:[%s5813_s5] sm:$0xff] }
 0x2e6   : > { %v2302_v20 = vpop.f32.mrb[118].mxu0  ;;  %v3901_v63 = vpop.f32.mrb[154].mxu1  ;;  %v3147_v60 = vld [vmem:[%s5813_s5 + $0x20] sm:$0x7f] }
 0x2e7   : > { %v3041_v9 = vadd.f32 %v3896_v53, %v2300_v13  ;;  %v2303_v24 = vadd.f32 %v2302_v20, %v5840_v8  ;;  %v3927_v17 = vpack.c.bf16 %v3136_v46, %v3135_v42  ;;  %v2304_v3 = vpop.f32.mrb[119].mxu0  ;;  %v2971_v47 = vpop.f32.mrb[155].mxu1  ;;  %v3238_v54 = vld [vmem:[%s5814_s6] sm:$0xff] }
 0x2e9   : > { %v3105_v55 = vmul.f32 %v3041_v9, %v3041_v9  ;;  %v3042_v7 = vadd.f32 %v3897_v59, %v2303_v24  ;;  %3928 = vmatprep.subr.bf16.mxu1 %v3927_v17 }
 0x2ea   : > { %3930 = vmatpush3.bf16.msra.mxu1 %v3929_v16 }
 0x2eb   : > { %v3137_v28 = vadd.f32 %v3105_v55, %v3073_v21  ;;  %v3106_v27 = vmul.f32 %v3042_v7, %v3042_v7 }
 0x2ec   : > { %v2307_v45 = vpop.f32.mrb[120].mxu0 }
 0x2ed   : > { %v3138_v58 = vadd.f32 %v3106_v27, %v3074_v36  ;;  %v2308_v51 = vadd.f32 %v2307_v45, %v5841_v43  ;;  %v2309_v52 = vpop.f32.mrb[121].mxu0 }
 0x2ee   : > { %v2310_v53 = vpop.f32.mrb[122].mxu0 }
 0x2ef   : > { %v2311_v10 = vadd.f32 %v2310_v53, %v5842_v57  ;;  %v3043_v29 = vadd.f32 %v2968_v61, %v2308_v51  ;;  %v3931_v56 = vpack.c.bf16 %v3138_v58, %v3137_v28  ;;  %v2312_v6 = vpop.f32.mrb[123].mxu0  ;;  %v3239_v28 = vld [vmem:[%s5814_s6 + $0x8] sm:$0x1f] }
 0x2f1   : > { %v3107_v22 = vmul.f32 %v3043_v29, %v3043_v29  ;;  %v3044_v16 = vadd.f32 %v2971_v47, %v2311_v10  ;;  %3932 = vmatprep.subr.bf16.mxu1 %v3931_v56 }
 0x2f2   : > { %3934 = vmatpush3.bf16.msra.mxu1 %v3933_v39 }
 0x2f3   : > { %v3139_v50 = vadd.f32 %v3107_v22, %v3075_v14  ;;  %v3108_v32 = vmul.f32 %v3044_v16, %v3044_v16 }
 0x2f4   : > { %v2315_v59 = vpop.f32.mrb[124].mxu0 }
 0x2f5   : > { %v3140_v1 = vadd.f32 %v3108_v32, %v3076_v31  ;;  %v2316_v40 = vadd.f32 %v2315_v59, %v5434_v41  ;;  %v2317_v23 = vpop.f32.mrb[125].mxu0  ;;  %v3078_v41 = vmul.f32 %v5586_v33, %v5586_v33  ;;  %v3145_v33 = vld [vmem:[%s5813_s5 + $0x10] sm:$0xff] }
 0x2f6   : > { %v2318_v62 = vpop.f32.mrb[126].mxu0 }
 0x2f7   : > { %v3045_v30 = vadd.f32 %v3900_v26, %v2316_v40  ;;  %v2319_v49 = vadd.f32 %v2318_v62, %v5843_v11  ;;  %v3935_v38 = vpack.c.bf16 %v3140_v1, %v3139_v50  ;;  %v2320_v5 = vpop.f32.mrb[127].mxu0 }
 0x2f9   : > { %v3109_v4 = vmul.f32 %v3045_v30, %v3045_v30  ;;  %v3046_v39 = vadd.f32 %v3901_v63, %v2319_v49  ;;  %3936 = vmatprep.subr.bf16.mxu1 %v3935_v38 }
 0x2fa   : > { %3938 = vmatpush3.bf16.msra.mxu1 %v3937_v25 }
 0x2fb   : > { %v3141_v18 = vadd.f32 %v3109_v4, %v3077_v37  ;;  %v3110_v15 = vmul.f32 %v3046_v39, %v3046_v39 }
 0x2fd   : > { %v3142_v0 = vadd.f32 %v3110_v15, %v3078_v41 }
 0x2ff   : > { %v3939_v42 = vpack.c.bf16 %v3142_v0, %v3141_v18 }
 0x301   : > { %3940 = vmatprep.subr.bf16.mxu1 %v3939_v42 }
 0x302   : > { %3942 = vmatpush3.bf16.msra.mxu1 %v5845_v48 }
 0x305   : > { %3214 = vmatmul.mubr.f32.vlgmr.msra.gmra.mrb[156].mxu1 %v3143_v19 }
 0x306   : > { %3218 = vmatprep.mubr.f32.mxu1 %v3146_v44 }
 0x309   : > { %3219 = vmatmul.mubr.f32.gmra.mrb[158].mxu1 %v3145_v33 }
 0x30a   : > { %3223 = vmatprep.mubr.f32.mxu1 %v3148_v34 }
 0x30d   : > { %3224 = vmatmul.mubr.f32.gmra.mrb[160].mxu1 %v3147_v60 }
 0x30e   : > { %3908 = vmatprep.mubr.msk.f32.mxu1 %vm3240_vm4, %v3238_v54 }
 0x3d8   : > { %v3814_v25 = vpop.f32.mrb[156].mxu1 }
 0x3d9   : > { %v3815_v26 = vpop.f32.mrb[157].mxu1 }
 0x3da   : > { %v3816_v46 = vadd.f32 %v3815_v26, %v3814_v25 }
 0x3dc   : > { %v3229_v35 = vmax.f32 %v3816_v46, 1.1920929e-07  ;;  %v3817_v13 = vpop.f32.mrb[158].mxu1 }
 0x3dd   : > { %v3818_v12 = vpop.f32.mrb[159].mxu1 }
 0x3de   : > { %v3819_v61 = vadd.f32 %v3818_v12, %v3817_v13  ;;  %4340 = vlog2.f32 %v3229_v35 }
 0x3e0   : > { %v3230_v20 = vmax.f32 %v3819_v61, 1.1920929e-07  ;;  %v3820_v63 = vpop.f32.mrb[160].mxu1 }
 0x3e1   : > { %v3821_v9 = vpop.f32.mrb[161].mxu1 }
 0x3e2   : > { %4342 = vlog2.f32 %v3230_v20  ;;  %v3822_v8 = vadd.f32 %v3821_v9, %v3820_v63 }
 0x3e4   : > { %v3231_v24 = vmax.f32 %v3822_v8, 1.1920929e-07 }
 0x3e6   : > { %4344 = vlog2.f32 %v3231_v24 }
 0x3e8   : > { %v4341_v17 = vpop.eup %4340 }
 0x3e9   : > { %v3233_v47 = vmul.f32 0.6931472, %v4341_v17 }
 0x3ec   : > { %v4343_v3 = vpop.eup %4342 }
 0x3ed   : > { %v3235_v21 = vmul.f32 0.6931472, %v4343_v3 }
 0x3ef   : > { %v3943_v55 = vpack.c.bf16 %v3235_v21, %v3233_v47 }
 0x3f0   : > { %v4345_v7 = vpop.eup %4344 }
 0x3f1   : > { %v3237_v36 = vmul.f32 0.6931472, %v4345_v7  ;;  %3944 = vmatprep.subr.bf16.mxu1 %v3943_v55 }
 0x3f2   : > { %3946 = vmatpush3.bf16.msra.mxu1 %v3943_v55 }
 0x3f3   : > { %3906 = vmatprep.subr.msk.mxu1 %vm3247_vm5, %v3237_v36 }
 0x3f6   : > { %3907 = vmatpush3.msk.msra.mxu1 %vm3247_vm5, %v3237_v36 }
 0x3f7   : > { %3909 = vmatmul.mubr.msk.f32.vlgmr.msra.gmra.mrb[162].mxu1 %vm3240_vm4, %v3239_v28 }
 0x4ca   : > { %v3910_v27 = vpop.f32.mrb[162].mxu1 }
 0x4cb   : > { %3327 = vst [vmem:[%s564_s13 + $0x8] sm:$0x1f] %v3910_v27  ;;  %v3317_v45 = vpop.f32.mrb[163].mxu1 }
 0x4cc   : > { %3326 = vst [vmem:[%s564_s13] sm:$0xff] %v3317_v45 }
 0x4cd PF: > { %s17_s28 = sadd.s32 1, %s4384_s28   ;;  %s5846_s24 = smov %s4372_s25 }
 0x4ce   : > { %p14_p10 = scmp.ge.s32.totalorder %s17_s28, 4   ;;  %s5847_s25 = smov %s4468_s10 }
 0x4cf   : > { %s5848_s26 = smov %s4380_s27  ;;  %s5849_s27 = smov %s5851_s29 }
 0x4d0   :  { %16 = sbr.rel (!%p14_p10) target bundleno = 3 (0x3), region = 173 }

</bundles_post_ra>
